<compile_context>
chip_gen: v7x
topology: tpu7x:2x2x1
jax: 0.10.0
libtpu: 0.0.40
codegen_flags: <defaults>
</compile_context>

<pallas_src>
import math
import functools

import jax
import jax.numpy as jnp
from jax.experimental import pallas as pl
from jax.experimental.pallas import tpu as pltpu


# ----------------------------------------------------------------------------
# Tiling helpers
# ----------------------------------------------------------------------------
def _pick_batch_tile(batch, seq):
    """Batch-group size Bt: try to give each grid step >= 256 rows.

    Bt must satisfy the block-shape rule for the (S, Bt, D) block: Bt == B or
    Bt a multiple of 8 that divides B.
    """
    if batch * seq <= 4096:          # small problems: one grid step over all of B
        return batch
    divisors8 = [bt for bt in range(8, batch + 1, 8) if batch % bt == 0]
    if not divisors8:
        return batch
    target = max(1, -(-256 // seq))  # ceil(256 / seq)
    for bt in divisors8:
        if bt >= target:
            return bt
    return divisors8[-1]


def _pick_vocab_tile(v_padded):
    """Vocab tile (multiple of 128, divides the padded vocab)."""
    for t in (2048, 1024, 512, 256, 128):
        if v_padded % t == 0:
            return t
    return v_padded


# ----------------------------------------------------------------------------
# Pallas kernels
# ----------------------------------------------------------------------------
def encoder_layer_kernel(x_ref, wqkv_t_ref, bqkv_ref, wo_ref, bo_ref,
                         w1_ref, b1_ref, w2_ref, b2_ref,
                         ln1w_ref, ln1b_ref, ln2w_ref, ln2b_ref,
                         o_ref, *, nhead, eps):
    """One post-norm nn.TransformerEncoderLayer (relu activation, eval mode).

    Block is (S, Bt, D) seq-first.  Weights are bf16, biases / LN params f32.
    The 1/sqrt(hd) attention scale is pre-folded into the q rows of wqkv_t.
    """
    seq, bt, d_model = x_ref.shape
    hd = d_model // nhead

    # hoist weight loads out of the per-batch-element loop
    wqkv_t = wqkv_t_ref[...]          # (3D, D) bf16
    bqkv = bqkv_ref[...]              # (3D, 1) f32
    wo, bo = wo_ref[...], bo_ref[...]
    w1, b1 = w1_ref[...], b1_ref[...]
    w2, b2 = w2_ref[...], b2_ref[...]
    g1, be1 = ln1w_ref[...], ln1b_ref[...]
    g2, be2 = ln2w_ref[...], ln2b_ref[...]

    def layernorm(y, g, b):           # f32 LayerNorm over the feature (lane) axis
        mu = jnp.mean(y, axis=-1, keepdims=True)
        var = jnp.mean((y - mu) ** 2, axis=-1, keepdims=True)
        return (y - mu) * jax.lax.rsqrt(var + eps) * g + b

    # static unroll over the Bt batch elements held in this block (attention
    # only mixes along the sequence axis within a batch element)
    for b in range(bt):
        x_b = x_ref[:, b, :]                                        # (S, D) f32

        # fused QKV projection: (3D, D) @ (D, S) -> (3D, S), bf16 x bf16 -> f32
        x_t = x_b.T.astype(jnp.bfloat16)                            # (D, S)
        qkv_t = jnp.dot(wqkv_t, x_t,
                        preferred_element_type=jnp.float32) + bqkv  # (3D, S)
        qkv_h = qkv_t.reshape(3, nhead, hd, seq)
        q = jnp.swapaxes(qkv_h[0], 1, 2).astype(jnp.bfloat16)       # (H, S, hd)
        k = jnp.swapaxes(qkv_h[1], 1, 2).astype(jnp.bfloat16)
        v = jnp.swapaxes(qkv_h[2], 1, 2).astype(jnp.bfloat16)

        # head-batched attention: one batched contraction per step (batch = H)
        s = jnp.einsum("hqd,hkd->hqk", q, k,
                       preferred_element_type=jnp.float32)          # (H, S, S) f32
        s = s - jnp.max(s, axis=-1, keepdims=True)
        p = jnp.exp(s)
        p = p * pl.reciprocal(jnp.sum(p, axis=-1, keepdims=True), approx=True)
        ctx = jnp.einsum("hqk,hkd->hqd", p.astype(jnp.bfloat16), v,
                         preferred_element_type=jnp.float32)        # (H, S, hd)

        # heads back to (S, D) rows (no lane-axis concatenate) + out projection
        attn = jnp.swapaxes(ctx, 1, 2).reshape(d_model, seq).T      # (S, D) f32
        attn = jnp.dot(attn.astype(jnp.bfloat16), wo,
                       preferred_element_type=jnp.float32) + bo

        x1 = layernorm(x_b + attn, g1, be1)

        # feed-forward (relu), bf16 matmuls with f32 accumulation
        h1 = jnp.dot(x1.astype(jnp.bfloat16), w1,
                     preferred_element_type=jnp.float32) + b1
        h1 = jnp.maximum(h1, 0.0)
        ff = jnp.dot(h1.astype(jnp.bfloat16), w2,
                     preferred_element_type=jnp.float32) + b2

        o_ref[:, b, :] = layernorm(x1 + ff, g2, be2)


def classifier_kernel(x_ref, lnw_ref, lnb_ref, wc_ref, bc_ref, o_ref, *, eps):
    """Final encoder LayerNorm + vocab-projection Linear for one vocab tile."""
    seq, bt, d_model = x_ref.shape
    rows = x_ref[...].reshape(seq * bt, d_model)                    # f32 rows
    mu = jnp.mean(rows, axis=-1, keepdims=True)
    var = jnp.mean((rows - mu) ** 2, axis=-1, keepdims=True)
    xn = (rows - mu) * jax.lax.rsqrt(var + eps) * lnw_ref[...] + lnb_ref[...]
    logits = jnp.dot(xn.astype(jnp.bfloat16), wc_ref[...],
                     preferred_element_type=jnp.float32) + bc_ref[...]
    o_ref[...] = logits.reshape(seq, bt, o_ref.shape[-1])


# ----------------------------------------------------------------------------
# pallas_call wrappers
# ----------------------------------------------------------------------------
_VMEM_LIMIT = 64 * 1024 * 1024  # safe on v5e/v6e/v7x

# TODO(synk): on v7x, single-buffer the constant-index weight blocks
# (pipeline_mode=pl.Buffered(1)) and stream w1/w2 over a dff grid axis; not
# applied here to keep the kernel maximally portable across JAX versions.


def run_encoder_layer(x, layer_params, *, nhead, eps):
    seq, batch, d_model = x.shape
    bt = _pick_batch_tile(batch, seq)
    kernel = functools.partial(encoder_layer_kernel, nhead=nhead, eps=eps)
    in_specs = [pl.BlockSpec((seq, bt, d_model), lambda g: (0, g, 0))]
    in_specs += [pl.BlockSpec(w.shape, lambda g: (0, 0)) for w in layer_params]
    return pl.pallas_call(
        kernel,
        out_shape=jax.ShapeDtypeStruct((seq, batch, d_model), jnp.float32),
        grid=(batch // bt,),
        in_specs=in_specs,
        out_specs=pl.BlockSpec((seq, bt, d_model), lambda g: (0, g, 0)),
        compiler_params=pltpu.CompilerParams(
            dimension_semantics=("parallel",),
            vmem_limit_bytes=_VMEM_LIMIT),
    )(x, *layer_params)


def run_classifier(x, head_params, *, eps):
    lnw, lnb, wc, bc = head_params
    seq, batch, d_model = x.shape
    v_pad = wc.shape[1]
    bt = _pick_batch_tile(batch, seq)
    tv = _pick_vocab_tile(v_pad)
    kernel = functools.partial(classifier_kernel, eps=eps)
    return pl.pallas_call(
        kernel,
        out_shape=jax.ShapeDtypeStruct((seq, batch, v_pad), jnp.float32),
        grid=(batch // bt, v_pad // tv),
        in_specs=[
            pl.BlockSpec((seq, bt, d_model), lambda i, j: (0, i, 0)),
            pl.BlockSpec(lnw.shape, lambda i, j: (0, 0)),
            pl.BlockSpec(lnb.shape, lambda i, j: (0, 0)),
            pl.BlockSpec((d_model, tv), lambda i, j: (0, j)),
            pl.BlockSpec((1, tv), lambda i, j: (0, j)),
        ],
        out_specs=pl.BlockSpec((seq, bt, tv), lambda i, j: (0, i, j)),
        compiler_params=pltpu.CompilerParams(
            dimension_semantics=("parallel", "parallel"),
            vmem_limit_bytes=_VMEM_LIMIT),
    )(x, lnw, lnb, wc, bc)


# ----------------------------------------------------------------------------
# Parameters (raw f32 "PyTorch math layout" + prepared kernel layout)
# ----------------------------------------------------------------------------
def make_params(key, *, d_model, nhead, dff, num_layers, vocab_size, maxlen=5000):
    std = 0.02
    keys = iter(jax.random.split(key, 1 + 12 * num_layers + 4))

    # token embedding table (padding_idx=0 row zero, as in nn.Embedding)
    emb = jax.random.normal(next(keys), (vocab_size, d_model), jnp.float32) * std
    emb = emb.at[0].set(0.0)

    # sinusoidal positional embedding (same formula as TokenEmbedding)
    den = jnp.exp(-jnp.arange(0, d_model, 2, dtype=jnp.float32)
                  * math.log(10000.0) / d_model)
    pos = jnp.arange(0, maxlen, dtype=jnp.float32)[:, None]
    pe = jnp.zeros((maxlen, d_model), jnp.float32)
    pe = pe.at[:, 0::2].set(jnp.sin(pos * den))
    pe = pe.at[:, 1::2].set(jnp.cos(pos * den))

    def rnd(shape, scale=std):
        return jax.random.normal(next(keys), shape, jnp.float32) * scale

    layers = []
    for _ in range(num_layers):
        layers.append(dict(
            wqkv=rnd((d_model, 3 * d_model)), bqkv=rnd((3 * d_model,)),
            wo=rnd((d_model, d_model)), bo=rnd((d_model,)),
            w1=rnd((d_model, dff)), b1=rnd((dff,)),
            w2=rnd((dff, d_model)), b2=rnd((d_model,)),
            ln1_w=1.0 + rnd((d_model,), 0.05), ln1_b=rnd((d_model,), 0.05),
            ln2_w=1.0 + rnd((d_model,), 0.05), ln2_b=rnd((d_model,), 0.05),
        ))

    head = dict(
        lnf_w=1.0 + rnd((d_model,), 0.05), lnf_b=rnd((d_model,), 0.05),
        wc=rnd((d_model, vocab_size)), bc=rnd((vocab_size,)),
    )
    return {"emb": emb, "pe": pe, "layers": layers, "head": head}


def prepare_kernel_params(raw, *, nhead):
    """bf16 weights, f32 biases/LN, transposed QKV with the scale folded in,
    vocab padded to a lane-dense multiple of 128."""
    d_model = raw["emb"].shape[1]
    hd = d_model // nhead
    scale = 1.0 / math.sqrt(hd)

    def row(v):
        return v.reshape(1, -1).astype(jnp.float32)

    layers = []
    for lp in raw["layers"]:
        wqkv_t = lp["wqkv"].T.at[:d_model].multiply(scale)   # (3D, D), q rows scaled
        bqkv = lp["bqkv"].at[:d_model].multiply(scale)
        layers.append((
            wqkv_t.astype(jnp.bfloat16),
            bqkv.reshape(-1, 1).astype(jnp.float32),
            lp["wo"].astype(jnp.bfloat16), row(lp["bo"]),
            lp["w1"].astype(jnp.bfloat16), row(lp["b1"]),
            lp["w2"].astype(jnp.bfloat16), row(lp["b2"]),
            row(lp["ln1_w"]), row(lp["ln1_b"]),
            row(lp["ln2_w"]), row(lp["ln2_b"]),
        ))

    hp = raw["head"]
    vocab = hp["wc"].shape[1]
    v_pad = ((vocab + 127) // 128) * 128
    wc = jnp.zeros((d_model, v_pad), jnp.float32).at[:, :vocab].set(hp["wc"])
    bc = jnp.zeros((v_pad,), jnp.float32).at[:vocab].set(hp["bc"])
    head = (row(hp["lnf_w"]), row(hp["lnf_b"]),
            wc.astype(jnp.bfloat16), bc.reshape(1, -1).astype(jnp.float32))
    return {"emb": raw["emb"], "pe": raw["pe"], "layers": layers, "head": head,
            "vocab_size": vocab}


# ----------------------------------------------------------------------------
# Full forward: tokens (S, B) int32 -> logits (S, B, V) float32
# ----------------------------------------------------------------------------
def bert_lm_forward(tokens, kp, *, d_model, nhead, eps):
    seq = tokens.shape[0]
    # TODO(synk): embedding gather + sinusoidal PE done in plain JAX (no clean
    # Pallas gather at this scale); dropout layers are identity (eval mode);
    # no src_key_padding_mask (the reference forward passes no mask either).
    x = kp["emb"][tokens] * math.sqrt(d_model) + kp["pe"][:seq][:, None, :]  # (S,B,D)

    for layer in kp["layers"]:
        x = run_encoder_layer(x, layer, nhead=nhead, eps=eps)

    logits = run_classifier(x, kp["head"], eps=eps)                 # (S, B, Vpad)
    vocab = kp["vocab_size"]
    if logits.shape[-1] != vocab:
        logits = logits[..., :vocab]
    return logits


# ----------------------------------------------------------------------------
# Pure-JAX f32 reference (module semantics) for the correctness check
# ----------------------------------------------------------------------------
def _ln_ref(y, g, b, eps):
    mu = jnp.mean(y, axis=-1, keepdims=True)
    var = jnp.mean((y - mu) ** 2, axis=-1, keepdims=True)
    return (y - mu) * jax.lax.rsqrt(var + eps) * g + b


def ref_forward(tokens, raw, *, d_model, nhead, eps):
    seq, batch = tokens.shape
    hd = d_model // nhead
    x = raw["emb"][tokens] * math.sqrt(d_model) + raw["pe"][:seq][:, None, :]
    for lp in raw["layers"]:
        qkv = x @ lp["wqkv"] + lp["bqkv"]
        q, k, v = jnp.split(qkv, 3, axis=-1)

        def heads(t):  # (S,B,D) -> (B,H,S,hd)
            return jnp.transpose(t.reshape(seq, batch, nhead, hd), (1, 2, 0, 3))

        qh, kh, vh = heads(q), heads(k), heads(v)
        s = jnp.einsum("bhqd,bhkd->bhqk", qh, kh) / math.sqrt(hd)
        p = jax.nn.softmax(s, axis=-1)
        a = jnp.einsum("bhqk,bhkd->bhqd", p, vh)
        a = jnp.transpose(a, (2, 0, 1, 3)).reshape(seq, batch, d_model)
        a = a @ lp["wo"] + lp["bo"]
        x1 = _ln_ref(x + a, lp["ln1_w"], lp["ln1_b"], eps)
        ff = jnp.maximum(x1 @ lp["w1"] + lp["b1"], 0.0) @ lp["w2"] + lp["b2"]
        x = _ln_ref(x1 + ff, lp["ln2_w"], lp["ln2_b"], eps)
    hp = raw["head"]
    xn = _ln_ref(x, hp["lnf_w"], hp["lnf_b"], eps)
    return xn @ hp["wc"] + hp["bc"]


# ----------------------------------------------------------------------------
if __name__ == "__main__":
    # small hyper-parameters consistent with BertLM(d_model, nhead, dff, layers, vocab)
    D_MODEL, NHEAD, DFF, NUM_LAYERS, VOCAB = 32, 4, 64, 2, 48
    EPS = 1e-5
    SEQ, BATCH = 8, 2

    key = jax.random.PRNGKey(0)
    k_tok, k_par = jax.random.split(key)
    tokens = jax.random.randint(k_tok, (SEQ, BATCH), 0, VOCAB, dtype=jnp.int32)

    raw_params = make_params(k_par, d_model=D_MODEL, nhead=NHEAD, dff=DFF,
                             num_layers=NUM_LAYERS, vocab_size=VOCAB)
    kparams = prepare_kernel_params(raw_params, nhead=NHEAD)

    out = bert_lm_forward(tokens, kparams, d_model=D_MODEL, nhead=NHEAD, eps=EPS)
    out = jax.block_until_ready(out)

    ref = ref_forward(tokens, raw_params, d_model=D_MODEL, nhead=NHEAD, eps=EPS)
    assert out.shape == (SEQ, BATCH, VOCAB), out.shape
    # kernel uses bf16 matmul operands (f32 accumulation) vs. the f32 reference
    assert jnp.allclose(out, ref, rtol=2e-2, atol=2e-2), "mismatch vs reference"

    print("KERNEL_OK")
</pallas_src>

<mosaic_0001>
module attributes {stable_mosaic.version = 11 : i64} {
  func.func @encoder_layer_kernel(%arg0: i32, %arg1: memref<8x2x32xf32, #tpu.memory_space<vmem>>, %arg2: memref<96x32xbf16, #tpu.memory_space<vmem>>, %arg3: memref<96x1xf32, #tpu.memory_space<vmem>>, %arg4: memref<32x32xbf16, #tpu.memory_space<vmem>>, %arg5: memref<1x32xf32, #tpu.memory_space<vmem>>, %arg6: memref<32x64xbf16, #tpu.memory_space<vmem>>, %arg7: memref<1x64xf32, #tpu.memory_space<vmem>>, %arg8: memref<64x32xbf16, #tpu.memory_space<vmem>>, %arg9: memref<1x32xf32, #tpu.memory_space<vmem>>, %arg10: memref<1x32xf32, #tpu.memory_space<vmem>>, %arg11: memref<1x32xf32, #tpu.memory_space<vmem>>, %arg12: memref<1x32xf32, #tpu.memory_space<vmem>>, %arg13: memref<1x32xf32, #tpu.memory_space<vmem>>, %arg14: memref<8x2x32xf32, #tpu.memory_space<vmem>>) attributes {dimension_semantics = [#tpu.dimension_semantics<parallel>], iteration_bounds = array<i64: 1>, scalar_prefetch = 0 : i64, scratch_operands = 0 : i64, tpu.core_type = #tpu.core_type<tc>, window_params = [{transform_indices = @transform_0, window_bounds = array<i64: 8, 2, 32>}, {pipeline_mode = #tpu.pipeline_mode<synchronous>, transform_indices = @transform_1, window_bounds = array<i64: 96, 32>}, {pipeline_mode = #tpu.pipeline_mode<synchronous>, transform_indices = @transform_2, window_bounds = array<i64: 96, 1>}, {pipeline_mode = #tpu.pipeline_mode<synchronous>, transform_indices = @transform_3, window_bounds = array<i64: 32, 32>}, {pipeline_mode = #tpu.pipeline_mode<synchronous>, transform_indices = @transform_4, window_bounds = array<i64: 1, 32>}, {pipeline_mode = #tpu.pipeline_mode<synchronous>, transform_indices = @transform_5, window_bounds = array<i64: 32, 64>}, {pipeline_mode = #tpu.pipeline_mode<synchronous>, transform_indices = @transform_6, window_bounds = array<i64: 1, 64>}, {pipeline_mode = #tpu.pipeline_mode<synchronous>, transform_indices = @transform_7, window_bounds = array<i64: 64, 32>}, {pipeline_mode = #tpu.pipeline_mode<synchronous>, transform_indices = @transform_8, window_bounds = array<i64: 1, 32>}, {pipeline_mode = #tpu.pipeline_mode<synchronous>, transform_indices = @transform_9, window_bounds = array<i64: 1, 32>}, {pipeline_mode = #tpu.pipeline_mode<synchronous>, transform_indices = @transform_10, window_bounds = array<i64: 1, 32>}, {pipeline_mode = #tpu.pipeline_mode<synchronous>, transform_indices = @transform_11, window_bounds = array<i64: 1, 32>}, {pipeline_mode = #tpu.pipeline_mode<synchronous>, transform_indices = @transform_12, window_bounds = array<i64: 1, 32>}, {transform_indices = @transform_13, window_bounds = array<i64: 8, 2, 32>}]} {
    %c0 = arith.constant 0 : index
    %c0_0 = arith.constant 0 : index
    %0 = vector.load %arg2[%c0, %c0_0] : memref<96x32xbf16, #tpu.memory_space<vmem>>, vector<96x32xbf16>
    %c0_1 = arith.constant 0 : index
    %c0_2 = arith.constant 0 : index
    %1 = vector.load %arg3[%c0_1, %c0_2] : memref<96x1xf32, #tpu.memory_space<vmem>>, vector<96x1xf32>
    %c0_3 = arith.constant 0 : index
    %c0_4 = arith.constant 0 : index
    %2 = vector.load %arg4[%c0_3, %c0_4] : memref<32x32xbf16, #tpu.memory_space<vmem>>, vector<32x32xbf16>
    %c0_5 = arith.constant 0 : index
    %c0_6 = arith.constant 0 : index
    %3 = vector.load %arg5[%c0_5, %c0_6] : memref<1x32xf32, #tpu.memory_space<vmem>>, vector<1x32xf32>
    %c0_7 = arith.constant 0 : index
    %c0_8 = arith.constant 0 : index
    %4 = vector.load %arg6[%c0_7, %c0_8] : memref<32x64xbf16, #tpu.memory_space<vmem>>, vector<32x64xbf16>
    %c0_9 = arith.constant 0 : index
    %c0_10 = arith.constant 0 : index
    %5 = vector.load %arg7[%c0_9, %c0_10] : memref<1x64xf32, #tpu.memory_space<vmem>>, vector<1x64xf32>
    %c0_11 = arith.constant 0 : index
    %c0_12 = arith.constant 0 : index
    %6 = vector.load %arg8[%c0_11, %c0_12] : memref<64x32xbf16, #tpu.memory_space<vmem>>, vector<64x32xbf16>
    %c0_13 = arith.constant 0 : index
    %c0_14 = arith.constant 0 : index
    %7 = vector.load %arg9[%c0_13, %c0_14] : memref<1x32xf32, #tpu.memory_space<vmem>>, vector<1x32xf32>
    %c0_15 = arith.constant 0 : index
    %c0_16 = arith.constant 0 : index
    %8 = vector.load %arg10[%c0_15, %c0_16] : memref<1x32xf32, #tpu.memory_space<vmem>>, vector<1x32xf32>
    %c0_17 = arith.constant 0 : index
    %c0_18 = arith.constant 0 : index
    %9 = vector.load %arg11[%c0_17, %c0_18] : memref<1x32xf32, #tpu.memory_space<vmem>>, vector<1x32xf32>
    %c0_19 = arith.constant 0 : index
    %c0_20 = arith.constant 0 : index
    %10 = vector.load %arg12[%c0_19, %c0_20] : memref<1x32xf32, #tpu.memory_space<vmem>>, vector<1x32xf32>
    %c0_21 = arith.constant 0 : index
    %c0_22 = arith.constant 0 : index
    %11 = vector.load %arg13[%c0_21, %c0_22] : memref<1x32xf32, #tpu.memory_space<vmem>>, vector<1x32xf32>
    %c0_23 = arith.constant 0 : index
    %c0_24 = arith.constant 0 : index
    %c0_25 = arith.constant 0 : index
    %12 = vector.load %arg1[%c0_23, %c0_24, %c0_25] : memref<8x2x32xf32, #tpu.memory_space<vmem>>, vector<8x1x32xf32>
    %13 = vector.shape_cast %12 : vector<8x1x32xf32> to vector<8x32xf32>
    %14 = tpu.transpose %13, [1, 0] : vector<8x32xf32> -> vector<32x8xf32>
    %15 = arith.truncf %14 : vector<32x8xf32> to vector<32x8xbf16>
    %cst = arith.constant dense<0.000000e+00> : vector<96x8xf32>
    %16 = tpu.matmul %0, %15, %cst {dimension_numbers = #tpu.dot_dimension_numbers<[1], [0], [0], [1], [0, 0, 1, 1], [], []>} : vector<96x32xbf16>, vector<32x8xbf16>, vector<96x8xf32> -> vector<96x8xf32>
    %17 = vector.broadcast %1 : vector<96x1xf32> to vector<96x8xf32>
    %18 = arith.addf %16, %17 : vector<96x8xf32>
    %19 = vector.shape_cast %18 : vector<96x8xf32> to vector<3x4x8x8xf32>
    %20 = vector.extract_strided_slice %19 {offsets = [0, 0, 0, 0], sizes = [1, 4, 8, 8], strides = [1, 1, 1, 1]} : vector<3x4x8x8xf32> to vector<1x4x8x8xf32>
    %21 = vector.shape_cast %20 : vector<1x4x8x8xf32> to vector<4x8x8xf32>
    %22 = tpu.transpose %21, [0, 2, 1] : vector<4x8x8xf32> -> vector<4x8x8xf32>
    %23 = arith.truncf %22 : vector<4x8x8xf32> to vector<4x8x8xbf16>
    %24 = vector.extract_strided_slice %19 {offsets = [1, 0, 0, 0], sizes = [1, 4, 8, 8], strides = [1, 1, 1, 1]} : vector<3x4x8x8xf32> to vector<1x4x8x8xf32>
    %25 = vector.shape_cast %24 : vector<1x4x8x8xf32> to vector<4x8x8xf32>
    %26 = tpu.transpose %25, [0, 2, 1] : vector<4x8x8xf32> -> vector<4x8x8xf32>
    %27 = arith.truncf %26 : vector<4x8x8xf32> to vector<4x8x8xbf16>
    %28 = vector.extract_strided_slice %19 {offsets = [2, 0, 0, 0], sizes = [1, 4, 8, 8], strides = [1, 1, 1, 1]} : vector<3x4x8x8xf32> to vector<1x4x8x8xf32>
    %29 = vector.shape_cast %28 : vector<1x4x8x8xf32> to vector<4x8x8xf32>
    %30 = tpu.transpose %29, [0, 2, 1] : vector<4x8x8xf32> -> vector<4x8x8xf32>
    %31 = arith.truncf %30 : vector<4x8x8xf32> to vector<4x8x8xbf16>
    "tpu.trace_start"() <{level = 10 : i32, message = "hqd,hkd->hqk"}> : () -> ()
    %cst_26 = arith.constant dense<0.000000e+00> : vector<4x8x8xf32>
    %32 = tpu.matmul %23, %27, %cst_26 {dimension_numbers = #tpu.dot_dimension_numbers<[2], [2], [1], [1], [0, 0, 0, 1, 1, 1], [0], [0]>} : vector<4x8x8xbf16>, vector<4x8x8xbf16>, vector<4x8x8xf32> -> vector<4x8x8xf32>
    "tpu.trace_stop"() : () -> ()
    %cst_27 = arith.constant dense<0xFF800000> : vector<4x8xf32>
    %33 = vector.multi_reduction <maximumf>, %32, %cst_27 [2] : vector<4x8x8xf32> to vector<4x8xf32>
    %34 = vector.shape_cast %33 : vector<4x8xf32> to vector<4x8x1xf32>
    %35 = vector.broadcast %34 : vector<4x8x1xf32> to vector<4x8x8xf32>
    %36 = arith.subf %32, %35 : vector<4x8x8xf32>
    %37 = math.exp %36 : vector<4x8x8xf32>
    %cst_28 = arith.constant dense<0.000000e+00> : vector<4x8xf32>
    %38 = vector.multi_reduction <add>, %37, %cst_28 [2] : vector<4x8x8xf32> to vector<4x8xf32>
    %39 = vector.shape_cast %38 : vector<4x8xf32> to vector<4x8x1xf32>
    %40 = tpu.reciprocal %39 {approx = true} : vector<4x8x1xf32> -> vector<4x8x1xf32>
    %41 = vector.broadcast %40 : vector<4x8x1xf32> to vector<4x8x8xf32>
    %42 = arith.mulf %37, %41 : vector<4x8x8xf32>
    %43 = arith.truncf %42 : vector<4x8x8xf32> to vector<4x8x8xbf16>
    "tpu.trace_start"() <{level = 10 : i32, message = "hqk,hkd->hqd"}> : () -> ()
    %cst_29 = arith.constant dense<0.000000e+00> : vector<4x8x8xf32>
    %44 = tpu.matmul %43, %31, %cst_29 {dimension_numbers = #tpu.dot_dimension_numbers<[2], [1], [1], [2], [0, 0, 0, 1, 1, 2], [0], [0]>} : vector<4x8x8xbf16>, vector<4x8x8xbf16>, vector<4x8x8xf32> -> vector<4x8x8xf32>
    "tpu.trace_stop"() : () -> ()
    %45 = tpu.transpose %44, [0, 2, 1] : vector<4x8x8xf32> -> vector<4x8x8xf32>
    %46 = vector.shape_cast %45 : vector<4x8x8xf32> to vector<32x8xf32>
    %47 = tpu.transpose %46, [1, 0] : vector<32x8xf32> -> vector<8x32xf32>
    %48 = arith.truncf %47 : vector<8x32xf32> to vector<8x32xbf16>
    %cst_30 = arith.constant dense<0.000000e+00> : vector<8x32xf32>
    %49 = tpu.matmul %48, %2, %cst_30 {dimension_numbers = #tpu.dot_dimension_numbers<[1], [0], [0], [1], [0, 0, 1, 1], [], []>} : vector<8x32xbf16>, vector<32x32xbf16>, vector<8x32xf32> -> vector<8x32xf32>
    %50 = vector.broadcast %3 : vector<1x32xf32> to vector<8x32xf32>
    %51 = arith.addf %49, %50 : vector<8x32xf32>
    %52 = arith.addf %13, %51 : vector<8x32xf32>
    %cst_31 = arith.constant dense<0.000000e+00> : vector<8xf32>
    %53 = vector.multi_reduction <add>, %52, %cst_31 [1] : vector<8x32xf32> to vector<8xf32>
    %54 = vector.shape_cast %53 : vector<8xf32> to vector<8x1xf32>
    %cst_32 = arith.constant 3.200000e+01 : f32
    %55 = vector.broadcast %cst_32 : f32 to vector<8x1xf32>
    %56 = arith.divf %54, %55 : vector<8x1xf32>
    %57 = vector.broadcast %56 : vector<8x1xf32> to vector<8x32xf32>
    %58 = arith.subf %52, %57 : vector<8x32xf32>
    %59 = arith.mulf %58, %58 : vector<8x32xf32>
    %cst_33 = arith.constant dense<0.000000e+00> : vector<8xf32>
    %60 = vector.multi_reduction <add>, %59, %cst_33 [1] : vector<8x32xf32> to vector<8xf32>
    %61 = vector.shape_cast %60 : vector<8xf32> to vector<8x1xf32>
    %cst_34 = arith.constant 3.200000e+01 : f32
    %62 = vector.broadcast %cst_34 : f32 to vector<8x1xf32>
    %63 = arith.divf %61, %62 : vector<8x1xf32>
    %64 = vector.broadcast %56 : vector<8x1xf32> to vector<8x32xf32>
    %65 = arith.subf %52, %64 : vector<8x32xf32>
    %cst_35 = arith.constant 9.99999974E-6 : f32
    %66 = vector.broadcast %cst_35 : f32 to vector<8x1xf32>
    %67 = arith.addf %63, %66 : vector<8x1xf32>
    %68 = math.rsqrt %67 : vector<8x1xf32>
    %69 = vector.broadcast %68 : vector<8x1xf32> to vector<8x32xf32>
    %70 = arith.mulf %65, %69 : vector<8x32xf32>
    %71 = vector.broadcast %8 : vector<1x32xf32> to vector<8x32xf32>
    %72 = arith.mulf %70, %71 : vector<8x32xf32>
    %73 = vector.broadcast %9 : vector<1x32xf32> to vector<8x32xf32>
    %74 = arith.addf %72, %73 : vector<8x32xf32>
    %75 = arith.truncf %74 : vector<8x32xf32> to vector<8x32xbf16>
    %cst_36 = arith.constant dense<0.000000e+00> : vector<8x64xf32>
    %76 = tpu.matmul %75, %4, %cst_36 {dimension_numbers = #tpu.dot_dimension_numbers<[1], [0], [0], [1], [0, 0, 1, 1], [], []>} : vector<8x32xbf16>, vector<32x64xbf16>, vector<8x64xf32> -> vector<8x64xf32>
    %77 = vector.broadcast %5 : vector<1x64xf32> to vector<8x64xf32>
    %78 = arith.addf %76, %77 : vector<8x64xf32>
    %cst_37 = arith.constant 0.000000e+00 : f32
    %79 = vector.broadcast %cst_37 : f32 to vector<8x64xf32>
    %80 = arith.maximumf %78, %79 : vector<8x64xf32>
    %81 = arith.truncf %80 : vector<8x64xf32> to vector<8x64xbf16>
    %cst_38 = arith.constant dense<0.000000e+00> : vector<8x32xf32>
    %82 = tpu.matmul %81, %6, %cst_38 {dimension_numbers = #tpu.dot_dimension_numbers<[1], [0], [0], [1], [0, 0, 1, 1], [], []>} : vector<8x64xbf16>, vector<64x32xbf16>, vector<8x32xf32> -> vector<8x32xf32>
    %83 = vector.broadcast %7 : vector<1x32xf32> to vector<8x32xf32>
    %84 = arith.addf %82, %83 : vector<8x32xf32>
    %85 = arith.addf %74, %84 : vector<8x32xf32>
    %cst_39 = arith.constant dense<0.000000e+00> : vector<8xf32>
    %86 = vector.multi_reduction <add>, %85, %cst_39 [1] : vector<8x32xf32> to vector<8xf32>
    %87 = vector.shape_cast %86 : vector<8xf32> to vector<8x1xf32>
    %cst_40 = arith.constant 3.200000e+01 : f32
    %88 = vector.broadcast %cst_40 : f32 to vector<8x1xf32>
    %89 = arith.divf %87, %88 : vector<8x1xf32>
    %90 = vector.broadcast %89 : vector<8x1xf32> to vector<8x32xf32>
    %91 = arith.subf %85, %90 : vector<8x32xf32>
    %92 = arith.mulf %91, %91 : vector<8x32xf32>
    %cst_41 = arith.constant dense<0.000000e+00> : vector<8xf32>
    %93 = vector.multi_reduction <add>, %92, %cst_41 [1] : vector<8x32xf32> to vector<8xf32>
    %94 = vector.shape_cast %93 : vector<8xf32> to vector<8x1xf32>
    %cst_42 = arith.constant 3.200000e+01 : f32
    %95 = vector.broadcast %cst_42 : f32 to vector<8x1xf32>
    %96 = arith.divf %94, %95 : vector<8x1xf32>
    %97 = vector.broadcast %89 : vector<8x1xf32> to vector<8x32xf32>
    %98 = arith.subf %85, %97 : vector<8x32xf32>
    %cst_43 = arith.constant 9.99999974E-6 : f32
    %99 = vector.broadcast %cst_43 : f32 to vector<8x1xf32>
    %100 = arith.addf %96, %99 : vector<8x1xf32>
    %101 = math.rsqrt %100 : vector<8x1xf32>
    %102 = vector.broadcast %101 : vector<8x1xf32> to vector<8x32xf32>
    %103 = arith.mulf %98, %102 : vector<8x32xf32>
    %104 = vector.broadcast %10 : vector<1x32xf32> to vector<8x32xf32>
    %105 = arith.mulf %103, %104 : vector<8x32xf32>
    %106 = vector.broadcast %11 : vector<1x32xf32> to vector<8x32xf32>
    %107 = arith.addf %105, %106 : vector<8x32xf32>
    %c0_44 = arith.constant 0 : index
    %c0_45 = arith.constant 0 : index
    %c0_46 = arith.constant 0 : index
    %108 = vector.load %arg14[%c0_44, %c0_45, %c0_46] : memref<8x2x32xf32, #tpu.memory_space<vmem>>, vector<8x1x32xf32>
    %109 = vector.shape_cast %108 : vector<8x1x32xf32> to vector<8x32xf32>
    %110 = vector.shape_cast %107 : vector<8x32xf32> to vector<8x1x32xf32>
    tpu.vector_store %arg14[%c0_44, %c0_45, %c0_46], %110 {strides = array<i32>} : memref<8x2x32xf32, #tpu.memory_space<vmem>>, vector<8x1x32xf32>,
    %c0_47 = arith.constant 0 : index
    %c1 = arith.constant 1 : index
    %c0_48 = arith.constant 0 : index
    %111 = vector.load %arg1[%c0_47, %c1, %c0_48] : memref<8x2x32xf32, #tpu.memory_space<vmem>>, vector<8x1x32xf32>
    %112 = vector.shape_cast %111 : vector<8x1x32xf32> to vector<8x32xf32>
    %113 = tpu.transpose %112, [1, 0] : vector<8x32xf32> -> vector<32x8xf32>
    %114 = arith.truncf %113 : vector<32x8xf32> to vector<32x8xbf16>
    %cst_49 = arith.constant dense<0.000000e+00> : vector<96x8xf32>
    %115 = tpu.matmul %0, %114, %cst_49 {dimension_numbers = #tpu.dot_dimension_numbers<[1], [0], [0], [1], [0, 0, 1, 1], [], []>} : vector<96x32xbf16>, vector<32x8xbf16>, vector<96x8xf32> -> vector<96x8xf32>
    %116 = vector.broadcast %1 : vector<96x1xf32> to vector<96x8xf32>
    %117 = arith.addf %115, %116 : vector<96x8xf32>
    %118 = vector.shape_cast %117 : vector<96x8xf32> to vector<3x4x8x8xf32>
    %119 = vector.extract_strided_slice %118 {offsets = [0, 0, 0, 0], sizes = [1, 4, 8, 8], strides = [1, 1, 1, 1]} : vector<3x4x8x8xf32> to vector<1x4x8x8xf32>
    %120 = vector.shape_cast %119 : vector<1x4x8x8xf32> to vector<4x8x8xf32>
    %121 = tpu.transpose %120, [0, 2, 1] : vector<4x8x8xf32> -> vector<4x8x8xf32>
    %122 = arith.truncf %121 : vector<4x8x8xf32> to vector<4x8x8xbf16>
    %123 = vector.extract_strided_slice %118 {offsets = [1, 0, 0, 0], sizes = [1, 4, 8, 8], strides = [1, 1, 1, 1]} : vector<3x4x8x8xf32> to vector<1x4x8x8xf32>
    %124 = vector.shape_cast %123 : vector<1x4x8x8xf32> to vector<4x8x8xf32>
    %125 = tpu.transpose %124, [0, 2, 1] : vector<4x8x8xf32> -> vector<4x8x8xf32>
    %126 = arith.truncf %125 : vector<4x8x8xf32> to vector<4x8x8xbf16>
    %127 = vector.extract_strided_slice %118 {offsets = [2, 0, 0, 0], sizes = [1, 4, 8, 8], strides = [1, 1, 1, 1]} : vector<3x4x8x8xf32> to vector<1x4x8x8xf32>
    %128 = vector.shape_cast %127 : vector<1x4x8x8xf32> to vector<4x8x8xf32>
    %129 = tpu.transpose %128, [0, 2, 1] : vector<4x8x8xf32> -> vector<4x8x8xf32>
    %130 = arith.truncf %129 : vector<4x8x8xf32> to vector<4x8x8xbf16>
    "tpu.trace_start"() <{level = 10 : i32, message = "hqd,hkd->hqk"}> : () -> ()
    %cst_50 = arith.constant dense<0.000000e+00> : vector<4x8x8xf32>
    %131 = tpu.matmul %122, %126, %cst_50 {dimension_numbers = #tpu.dot_dimension_numbers<[2], [2], [1], [1], [0, 0, 0, 1, 1, 1], [0], [0]>} : vector<4x8x8xbf16>, vector<4x8x8xbf16>, vector<4x8x8xf32> -> vector<4x8x8xf32>
    "tpu.trace_stop"() : () -> ()
    %cst_51 = arith.constant dense<0xFF800000> : vector<4x8xf32>
    %132 = vector.multi_reduction <maximumf>, %131, %cst_51 [2] : vector<4x8x8xf32> to vector<4x8xf32>
    %133 = vector.shape_cast %132 : vector<4x8xf32> to vector<4x8x1xf32>
    %134 = vector.broadcast %133 : vector<4x8x1xf32> to vector<4x8x8xf32>
    %135 = arith.subf %131, %134 : vector<4x8x8xf32>
    %136 = math.exp %135 : vector<4x8x8xf32>
    %cst_52 = arith.constant dense<0.000000e+00> : vector<4x8xf32>
    %137 = vector.multi_reduction <add>, %136, %cst_52 [2] : vector<4x8x8xf32> to vector<4x8xf32>
    %138 = vector.shape_cast %137 : vector<4x8xf32> to vector<4x8x1xf32>
    %139 = tpu.reciprocal %138 {approx = true} : vector<4x8x1xf32> -> vector<4x8x1xf32>
    %140 = vector.broadcast %139 : vector<4x8x1xf32> to vector<4x8x8xf32>
    %141 = arith.mulf %136, %140 : vector<4x8x8xf32>
    %142 = arith.truncf %141 : vector<4x8x8xf32> to vector<4x8x8xbf16>
    "tpu.trace_start"() <{level = 10 : i32, message = "hqk,hkd->hqd"}> : () -> ()
    %cst_53 = arith.constant dense<0.000000e+00> : vector<4x8x8xf32>
    %143 = tpu.matmul %142, %130, %cst_53 {dimension_numbers = #tpu.dot_dimension_numbers<[2], [1], [1], [2], [0, 0, 0, 1, 1, 2], [0], [0]>} : vector<4x8x8xbf16>, vector<4x8x8xbf16>, vector<4x8x8xf32> -> vector<4x8x8xf32>
    "tpu.trace_stop"() : () -> ()
    %144 = tpu.transpose %143, [0, 2, 1] : vector<4x8x8xf32> -> vector<4x8x8xf32>
    %145 = vector.shape_cast %144 : vector<4x8x8xf32> to vector<32x8xf32>
    %146 = tpu.transpose %145, [1, 0] : vector<32x8xf32> -> vector<8x32xf32>
    %147 = arith.truncf %146 : vector<8x32xf32> to vector<8x32xbf16>
    %cst_54 = arith.constant dense<0.000000e+00> : vector<8x32xf32>
    %148 = tpu.matmul %147, %2, %cst_54 {dimension_numbers = #tpu.dot_dimension_numbers<[1], [0], [0], [1], [0, 0, 1, 1], [], []>} : vector<8x32xbf16>, vector<32x32xbf16>, vector<8x32xf32> -> vector<8x32xf32>
    %149 = vector.broadcast %3 : vector<1x32xf32> to vector<8x32xf32>
    %150 = arith.addf %148, %149 : vector<8x32xf32>
    %151 = arith.addf %112, %150 : vector<8x32xf32>
    %cst_55 = arith.constant dense<0.000000e+00> : vector<8xf32>
    %152 = vector.multi_reduction <add>, %151, %cst_55 [1] : vector<8x32xf32> to vector<8xf32>
    %153 = vector.shape_cast %152 : vector<8xf32> to vector<8x1xf32>
    %cst_56 = arith.constant 3.200000e+01 : f32
    %154 = vector.broadcast %cst_56 : f32 to vector<8x1xf32>
    %155 = arith.divf %153, %154 : vector<8x1xf32>
    %156 = vector.broadcast %155 : vector<8x1xf32> to vector<8x32xf32>
    %157 = arith.subf %151, %156 : vector<8x32xf32>
    %158 = arith.mulf %157, %157 : vector<8x32xf32>
    %cst_57 = arith.constant dense<0.000000e+00> : vector<8xf32>
    %159 = vector.multi_reduction <add>, %158, %cst_57 [1] : vector<8x32xf32> to vector<8xf32>
    %160 = vector.shape_cast %159 : vector<8xf32> to vector<8x1xf32>
    %cst_58 = arith.constant 3.200000e+01 : f32
    %161 = vector.broadcast %cst_58 : f32 to vector<8x1xf32>
    %162 = arith.divf %160, %161 : vector<8x1xf32>
    %163 = vector.broadcast %155 : vector<8x1xf32> to vector<8x32xf32>
    %164 = arith.subf %151, %163 : vector<8x32xf32>
    %cst_59 = arith.constant 9.99999974E-6 : f32
    %165 = vector.broadcast %cst_59 : f32 to vector<8x1xf32>
    %166 = arith.addf %162, %165 : vector<8x1xf32>
    %167 = math.rsqrt %166 : vector<8x1xf32>
    %168 = vector.broadcast %167 : vector<8x1xf32> to vector<8x32xf32>
    %169 = arith.mulf %164, %168 : vector<8x32xf32>
    %170 = vector.broadcast %8 : vector<1x32xf32> to vector<8x32xf32>
    %171 = arith.mulf %169, %170 : vector<8x32xf32>
    %172 = vector.broadcast %9 : vector<1x32xf32> to vector<8x32xf32>
    %173 = arith.addf %171, %172 : vector<8x32xf32>
    %174 = arith.truncf %173 : vector<8x32xf32> to vector<8x32xbf16>
    %cst_60 = arith.constant dense<0.000000e+00> : vector<8x64xf32>
    %175 = tpu.matmul %174, %4, %cst_60 {dimension_numbers = #tpu.dot_dimension_numbers<[1], [0], [0], [1], [0, 0, 1, 1], [], []>} : vector<8x32xbf16>, vector<32x64xbf16>, vector<8x64xf32> -> vector<8x64xf32>
    %176 = vector.broadcast %5 : vector<1x64xf32> to vector<8x64xf32>
    %177 = arith.addf %175, %176 : vector<8x64xf32>
    %cst_61 = arith.constant 0.000000e+00 : f32
    %178 = vector.broadcast %cst_61 : f32 to vector<8x64xf32>
    %179 = arith.maximumf %177, %178 : vector<8x64xf32>
    %180 = arith.truncf %179 : vector<8x64xf32> to vector<8x64xbf16>
    %cst_62 = arith.constant dense<0.000000e+00> : vector<8x32xf32>
    %181 = tpu.matmul %180, %6, %cst_62 {dimension_numbers = #tpu.dot_dimension_numbers<[1], [0], [0], [1], [0, 0, 1, 1], [], []>} : vector<8x64xbf16>, vector<64x32xbf16>, vector<8x32xf32> -> vector<8x32xf32>
    %182 = vector.broadcast %7 : vector<1x32xf32> to vector<8x32xf32>
    %183 = arith.addf %181, %182 : vector<8x32xf32>
    %184 = arith.addf %173, %183 : vector<8x32xf32>
    %cst_63 = arith.constant dense<0.000000e+00> : vector<8xf32>
    %185 = vector.multi_reduction <add>, %184, %cst_63 [1] : vector<8x32xf32> to vector<8xf32>
    %186 = vector.shape_cast %185 : vector<8xf32> to vector<8x1xf32>
    %cst_64 = arith.constant 3.200000e+01 : f32
    %187 = vector.broadcast %cst_64 : f32 to vector<8x1xf32>
    %188 = arith.divf %186, %187 : vector<8x1xf32>
    %189 = vector.broadcast %188 : vector<8x1xf32> to vector<8x32xf32>
    %190 = arith.subf %184, %189 : vector<8x32xf32>
    %191 = arith.mulf %190, %190 : vector<8x32xf32>
    %cst_65 = arith.constant dense<0.000000e+00> : vector<8xf32>
    %192 = vector.multi_reduction <add>, %191, %cst_65 [1] : vector<8x32xf32> to vector<8xf32>
    %193 = vector.shape_cast %192 : vector<8xf32> to vector<8x1xf32>
    %cst_66 = arith.constant 3.200000e+01 : f32
    %194 = vector.broadcast %cst_66 : f32 to vector<8x1xf32>
    %195 = arith.divf %193, %194 : vector<8x1xf32>
    %196 = vector.broadcast %188 : vector<8x1xf32> to vector<8x32xf32>
    %197 = arith.subf %184, %196 : vector<8x32xf32>
    %cst_67 = arith.constant 9.99999974E-6 : f32
    %198 = vector.broadcast %cst_67 : f32 to vector<8x1xf32>
    %199 = arith.addf %195, %198 : vector<8x1xf32>
    %200 = math.rsqrt %199 : vector<8x1xf32>
    %201 = vector.broadcast %200 : vector<8x1xf32> to vector<8x32xf32>
    %202 = arith.mulf %197, %201 : vector<8x32xf32>
    %203 = vector.broadcast %10 : vector<1x32xf32> to vector<8x32xf32>
    %204 = arith.mulf %202, %203 : vector<8x32xf32>
    %205 = vector.broadcast %11 : vector<1x32xf32> to vector<8x32xf32>
    %206 = arith.addf %204, %205 : vector<8x32xf32>
    %c0_68 = arith.constant 0 : index
    %c1_69 = arith.constant 1 : index
    %c0_70 = arith.constant 0 : index
    %207 = vector.load %arg14[%c0_68, %c1_69, %c0_70] : memref<8x2x32xf32, #tpu.memory_space<vmem>>, vector<8x1x32xf32>
    %208 = vector.shape_cast %207 : vector<8x1x32xf32> to vector<8x32xf32>
    %209 = vector.shape_cast %206 : vector<8x32xf32> to vector<8x1x32xf32>
    tpu.vector_store %arg14[%c0_68, %c1_69, %c0_70], %209 {strides = array<i32>} : memref<8x2x32xf32, #tpu.memory_space<vmem>>, vector<8x1x32xf32>,
    return
  }
  func.func @transform_0(%arg0: i32) -> (i32, i32, i32) {
    %c0_i32 = arith.constant 0 : i32
    %c0_i32_0 = arith.constant 0 : i32
    %c0_i32_1 = arith.constant 0 : i32
    return %c0_i32, %arg0, %c0_i32_0 : i32, i32, i32
  }
  func.func @transform_1(%arg0: i32) -> (i32, i32) {
    %c0_i32 = arith.constant 0 : i32
    %c0_i32_0 = arith.constant 0 : i32
    %c0_i32_1 = arith.constant 0 : i32
    return %c0_i32, %c0_i32_0 : i32, i32
  }
  func.func @transform_2(%arg0: i32) -> (i32, i32) {
    %c0_i32 = arith.constant 0 : i32
    %c0_i32_0 = arith.constant 0 : i32
    %c0_i32_1 = arith.constant 0 : i32
    return %c0_i32, %c0_i32_0 : i32, i32
  }
  func.func @transform_3(%arg0: i32) -> (i32, i32) {
    %c0_i32 = arith.constant 0 : i32
    %c0_i32_0 = arith.constant 0 : i32
    %c0_i32_1 = arith.constant 0 : i32
    return %c0_i32, %c0_i32_0 : i32, i32
  }
  func.func @transform_4(%arg0: i32) -> (i32, i32) {
    %c0_i32 = arith.constant 0 : i32
    %c0_i32_0 = arith.constant 0 : i32
    %c0_i32_1 = arith.constant 0 : i32
    return %c0_i32, %c0_i32_0 : i32, i32
  }
  func.func @transform_5(%arg0: i32) -> (i32, i32) {
    %c0_i32 = arith.constant 0 : i32
    %c0_i32_0 = arith.constant 0 : i32
    %c0_i32_1 = arith.constant 0 : i32
    return %c0_i32, %c0_i32_0 : i32, i32
  }
  func.func @transform_6(%arg0: i32) -> (i32, i32) {
    %c0_i32 = arith.constant 0 : i32
    %c0_i32_0 = arith.constant 0 : i32
    %c0_i32_1 = arith.constant 0 : i32
    return %c0_i32, %c0_i32_0 : i32, i32
  }
  func.func @transform_7(%arg0: i32) -> (i32, i32) {
    %c0_i32 = arith.constant 0 : i32
    %c0_i32_0 = arith.constant 0 : i32
    %c0_i32_1 = arith.constant 0 : i32
    return %c0_i32, %c0_i32_0 : i32, i32
  }
  func.func @transform_8(%arg0: i32) -> (i32, i32) {
    %c0_i32 = arith.constant 0 : i32
    %c0_i32_0 = arith.constant 0 : i32
    %c0_i32_1 = arith.constant 0 : i32
    return %c0_i32, %c0_i32_0 : i32, i32
  }
  func.func @transform_9(%arg0: i32) -> (i32, i32) {
    %c0_i32 = arith.constant 0 : i32
    %c0_i32_0 = arith.constant 0 : i32
    %c0_i32_1 = arith.constant 0 : i32
    return %c0_i32, %c0_i32_0 : i32, i32
  }
  func.func @transform_10(%arg0: i32) -> (i32, i32) {
    %c0_i32 = arith.constant 0 : i32
    %c0_i32_0 = arith.constant 0 : i32
    %c0_i32_1 = arith.constant 0 : i32
    return %c0_i32, %c0_i32_0 : i32, i32
  }
  func.func @transform_11(%arg0: i32) -> (i32, i32) {
    %c0_i32 = arith.constant 0 : i32
    %c0_i32_0 = arith.constant 0 : i32
    %c0_i32_1 = arith.constant 0 : i32
    return %c0_i32, %c0_i32_0 : i32, i32
  }
  func.func @transform_12(%arg0: i32) -> (i32, i32) {
    %c0_i32 = arith.constant 0 : i32
    %c0_i32_0 = arith.constant 0 : i32
    %c0_i32_1 = arith.constant 0 : i32
    return %c0_i32, %c0_i32_0 : i32, i32
  }
  func.func @transform_13(%arg0: i32) -> (i32, i32, i32) {
    %c0_i32 = arith.constant 0 : i32
    %c0_i32_0 = arith.constant 0 : i32
    %c0_i32_1 = arith.constant 0 : i32
    return %c0_i32, %arg0, %c0_i32_0 : i32, i32, i32
  }
}

</mosaic_0001>

<bundles_post_ra>
// kernel: tpu_custom_call.1
= control target key start
LH: loop header
LB: loop body
LE: loop exit
PB: predicated region body
PF: predicated region fallthrough
CT: control target
= control target key end

     0   :  { %18 = vsyncpa [#allocation3], 0  ;;  %s5439_s0 = inlined_call_operand.hbm [shape: f32[8,2,32], index: 0, kind: input, shape index: {}]   ;;  %s5440_s1 = inlined_call_operand.hbm [shape: bf16[96,32], index: 1, kind: input, shape index: {}]   ;;  %s5441_s2 = inlined_call_operand.hbm [shape: f32[96,1], index: 2, kind: input, shape index: {}]   ;;  %s5442_s3 = inlined_call_operand.hbm [shape: bf16[32,32], index: 3, kind: input, shape index: {}]   ;;  %s5443_s4 = inlined_call_operand.hbm [shape: f32[1,32], index: 4, kind: input, shape index: {}]   ;;  %s5444_s5 = inlined_call_operand.hbm [shape: bf16[32,64], index: 5, kind: input, shape index: {}]   ;;  %s5445_s6 = inlined_call_operand.hbm [shape: f32[1,64], index: 6, kind: input, shape index: {}]   ;;  %s5446_s7 = inlined_call_operand.hbm [shape: bf16[64,32], index: 7, kind: input, shape index: {}]   ;;  %s5447_s8 = inlined_call_operand.hbm [shape: f32[1,32], index: 8, kind: input, shape index: {}]   ;;  %s5448_s9 = inlined_call_operand.hbm [shape: f32[1,32], index: 9, kind: input, shape index: {}]   ;;  %s5449_s10 = inlined_call_operand.hbm [shape: f32[1,32], index: 10, kind: input, shape index: {}]   ;;  %s5450_s11 = inlined_call_operand.hbm [shape: f32[1,32], index: 11, kind: input, shape index: {}]   ;;  %s5451_s12 = inlined_call_operand.hbm [shape: f32[1,32], index: 12, kind: input, shape index: {}]   ;;  %s5452_s13 = inlined_call_operand.hbm [shape: f32[8,2,32], index: 13, kind: output, shape index: {}]  }
   0x1   :  { %19 = vsyncpa [#allocation6], 0 }
   0x2   :  { %20 = vsyncpa [#allocation9], 0 }
   0x3   :  { %21 = vsyncpa [#allocation12], 0 }
   0x4   :  { %22 = vsyncpa [#allocation15], 0 }
   0x5   :  { %23 = vsyncpa [#allocation18], 0 }
   0x6   :  { %24 = vsyncpa [#allocation21], 0 }
   0x7   :  { %25 = vsyncpa [#allocation4], 0  ;;  %s4435_s25 = smov [#allocation5]   ;;  %s4111_s29 = scalar_lea.hbm %s5440_s1, 768 }
   0x8   :  { %s43_s26 = sshll.u32 %s4435_s25, 4  ;;  %p4112_p0 = scmp.ne.s32.totalorder %s5440_s1, %s4111_s29  ;;  %s44_s26 = int_to_ptr.vmem [resolvable:$true] %s43_s26 }
   0x9   :  { %p4115_p1 = scmp.lt.u32.totalorder %s4111_s29, %s5440_s1 }
   0xb   :  { %p4117_p2 = pnand %p4115_p1, %p4112_p0 }
   0xd   :  { %4120 = shalt.err (!%p4117_p2)
}
   0xe   :  { %s4121_s17 = scalar_lea.vmem %s44_s26, 768  ;;  %p4126_p4 = scmp.lt.s32.totalorder %s44_s26, %s44_s26 }
   0xf   :  { %p4122_p3 = scmp.ne.s32.totalorder %s44_s26, %s4121_s17  ;;  %p4127_p5 = scmp.lt.s32.totalorder %s4121_s17, %s4121_s17 }
  0x11   :  { %p4128_p6 = por %p4127_p5, %p4126_p4 }
  0x13   :  { %p4129_p7 = pnand %p4128_p6, %p4122_p3 }
  0x15   :  { %4132 = shalt.err (!%p4129_p7)
}
  0x16   :  { %s4436_s18 = smov 64   ;;  %s4437_s19 = smov 4  }
  0x17   :  { %49 = dma.hbm_to_vmem [thread:$0]  %s5440_s1, 768, %s44_s26, [#allocation6], %s4436_s18, %s4436_s18, %s4437_s19  }
  0x18   :  { %s4438_s22 = smov [#allocation8]   ;;  %s4439_s24 = smov [#allocation11]  }
  0x19   :  { %s67_s23 = sshll.u32 %s4438_s22, 4  ;;  %s89_s25 = sshll.u32 %s4439_s24, 4  ;;  %s68_s23 = int_to_ptr.vmem [resolvable:$true] %s67_s23  ;;  %s90_s25 = int_to_ptr.vmem [resolvable:$true] %s89_s25 }
  0x1a   :  { %s4133_s29 = scalar_lea.hbm %s5442_s3, 256 }
  0x1b   :  { %p4134_p8 = scmp.ne.s32.totalorder %s5442_s3, %s4133_s29  ;;  %p4137_p9 = scmp.lt.u32.totalorder %s4133_s29, %s5442_s3 }
  0x1d   :  { %p4139_p10 = pnand %p4137_p9, %p4134_p8 }
  0x1f   :  { %4142 = shalt.err (!%p4139_p10)
}
  0x20   :  { %s4143_s1 = scalar_lea.vmem %s68_s23, 256  ;;  %p4148_p12 = scmp.lt.s32.totalorder %s68_s23, %s68_s23 }
  0x21   :  { %p4144_p11 = scmp.ne.s32.totalorder %s68_s23, %s4143_s1  ;;  %p4149_p13 = scmp.lt.s32.totalorder %s4143_s1, %s4143_s1 }
  0x23   :  { %p4150_p0 = por %p4149_p13, %p4148_p12 }
  0x25   :  { %p4151_p1 = pnand %p4150_p0, %p4144_p11 }
  0x27   :  { %4154 = shalt.err (!%p4151_p1)
}
  0x28   :  { %73 = dma.hbm_to_vmem [thread:$0]  %s5442_s3, 256, %s68_s23, [#allocation9], %s4436_s18, %s4436_s18, %s4437_s19  }
  0x29   :  { %s4155_s22 = scalar_lea.hbm %s5444_s5, 256 }
  0x2a   :  { %p4156_p2 = scmp.ne.s32.totalorder %s5444_s5, %s4155_s22  ;;  %p4159_p3 = scmp.lt.u32.totalorder %s4155_s22, %s5444_s5 }
  0x2c   :  { %p4161_p4 = pnand %p4159_p3, %p4156_p2 }
  0x2e   :  { %4164 = shalt.err (!%p4161_p4)
}
  0x2f   :  { %s4165_s30 = scalar_lea.vmem %s90_s25, 256  ;;  %p4170_p6 = scmp.lt.s32.totalorder %s90_s25, %s90_s25 }
  0x30   :  { %p4166_p5 = scmp.ne.s32.totalorder %s90_s25, %s4165_s30  ;;  %p4171_p7 = scmp.lt.s32.totalorder %s4165_s30, %s4165_s30 }
  0x32   :  { %p4172_p8 = por %p4171_p7, %p4170_p6 }
  0x34   :  { %p4173_p9 = pnand %p4172_p8, %p4166_p5 }
  0x36   :  { %4176 = shalt.err (!%p4173_p9)
}
  0x37   :  { %95 = dma.hbm_to_vmem [thread:$0]  %s5444_s5, 256, %s90_s25, [#allocation12], %s4436_s18, %s4436_s18, %s4437_s19  }
  0x38   :  { %s4440_s14 = smov [#allocation14]   ;;  %s4441_s16 = smov [#allocation17]  }
  0x39   :  { %s111_s15 = sshll.u32 %s4440_s14, 4  ;;  %s134_s1 = sshll.u32 %s4441_s16, 4  ;;  %s112_s15 = int_to_ptr.vmem [resolvable:$true] %s111_s15  ;;  %s135_s1 = int_to_ptr.vmem [resolvable:$true] %s134_s1 }
  0x3a   :  { %s4177_s20 = scalar_lea.hbm %s5446_s7, 512 }
  0x3b   :  { %p4178_p10 = scmp.ne.s32.totalorder %s5446_s7, %s4177_s20  ;;  %p4181_p11 = scmp.lt.u32.totalorder %s4177_s20, %s5446_s7 }
  0x3d   :  { %p4183_p12 = pnand %p4181_p11, %p4178_p10 }
  0x3f   :  { %4186 = shalt.err (!%p4183_p12)
}
  0x40   :  { %s4187_s5 = scalar_lea.vmem %s112_s15, 512  ;;  %p4192_p0 = scmp.lt.s32.totalorder %s112_s15, %s112_s15 }
  0x41   :  { %p4188_p13 = scmp.ne.s32.totalorder %s112_s15, %s4187_s5  ;;  %p4193_p1 = scmp.lt.s32.totalorder %s4187_s5, %s4187_s5 }
  0x43   :  { %p4194_p2 = por %p4193_p1, %p4192_p0 }
  0x45   :  { %p4195_p3 = pnand %p4194_p2, %p4188_p13 }
  0x47   :  { %4198 = shalt.err (!%p4195_p3)
}
  0x48   :  { %117 = dma.hbm_to_vmem [thread:$0]  %s5446_s7, 512, %s112_s15, [#allocation15], %s4436_s18, %s4436_s18, %s4437_s19  }
  0x49   :  { %s4199_s3 = scalar_lea.hbm %s5448_s9, 16 }
  0x4a   :  { %p4200_p4 = scmp.ne.s32.totalorder %s5448_s9, %s4199_s3  ;;  %p4203_p5 = scmp.lt.u32.totalorder %s4199_s3, %s5448_s9 }
  0x4c   :  { %p4205_p6 = pnand %p4203_p5, %p4200_p4 }
  0x4e   :  { %4208 = shalt.err (!%p4205_p6)
}
  0x4f   :  { %s4209_s17 = scalar_lea.vmem %s135_s1, 16  ;;  %s4213_s20 = scalar_lea.vmem %s135_s1, 32 }
  0x50   :  { %p4210_p7 = scmp.ne.s32.totalorder %s135_s1, %s4209_s17  ;;  %p4214_p8 = scmp.lt.s32.totalorder %s135_s1, %s135_s1 }
  0x51   :  { %p4215_p9 = scmp.lt.s32.totalorder %s4213_s20, %s4209_s17 }
  0x53   :  { %p4216_p10 = por %p4215_p9, %p4214_p8 }
  0x55   :  { %p4217_p11 = pnand %p4216_p10, %p4210_p7 }
  0x57   :  { %4220 = shalt.err (!%p4217_p11)
}
  0x58   :  { %137 = dma.hbm_to_vmem [thread:$0]  %s5448_s9, 16, %s135_s1, [#allocation18]  }
  0x59   :  { %s4442_s19 = smov [#allocation20]   ;;  %s4443_s21 = smov [#allocation2]  }
  0x5a   :  { %s154_s15 = sshll.u32 %s4442_s19, 4  ;;  %s31_s22 = sshll.u32 %s4443_s21, 4  ;;  %s155_s15 = int_to_ptr.vmem [resolvable:$true] %s154_s15  ;;  %s32_s22 = int_to_ptr.vmem [resolvable:$true] %s31_s22 }
  0x5b   :  { %s4221_s5 = scalar_lea.hbm %s5450_s11, 16 }
  0x5c   :  { %p4222_p12 = scmp.ne.s32.totalorder %s5450_s11, %s4221_s5  ;;  %p4225_p13 = scmp.lt.u32.totalorder %s4221_s5, %s5450_s11 }
  0x5e   :  { %p4227_p0 = pnand %p4225_p13, %p4222_p12 }
  0x60   :  { %4230 = shalt.err (!%p4227_p0)
}
  0x61   :  { %s4231_s9 = scalar_lea.vmem %s155_s15, 16  ;;  %s4235_s1 = scalar_lea.vmem %s155_s15, 32 }
  0x62   :  { %p4232_p1 = scmp.ne.s32.totalorder %s155_s15, %s4231_s9  ;;  %p4236_p2 = scmp.lt.s32.totalorder %s155_s15, %s155_s15 }
  0x63   :  { %p4237_p3 = scmp.lt.s32.totalorder %s4235_s1, %s4231_s9 }
  0x65   :  { %p4238_p4 = por %p4237_p3, %p4236_p2 }
  0x67   :  { %p4239_p5 = pnand %p4238_p4, %p4232_p1 }
  0x69   :  { %4242 = shalt.err (!%p4239_p5)
}
  0x6a   :  { %157 = dma.hbm_to_vmem [thread:$0]  %s5450_s11, 16, %s155_s15, [#allocation21]  }
  0x6b   :  { %s4243_s26 = scalar_lea.hbm %s5439_s0, 256 }
  0x6c   :  { %p4244_p6 = scmp.ne.s32.totalorder %s5439_s0, %s4243_s26  ;;  %p4247_p7 = scmp.lt.u32.totalorder %s4243_s26, %s5439_s0 }
  0x6e   :  { %p4249_p8 = pnand %p4247_p7, %p4244_p6 }
  0x70   :  { %4252 = shalt.err (!%p4249_p8)
}
  0x71   :  { %s4253_s19 = scalar_lea.vmem %s32_s22, 256  ;;  %p4258_p10 = scmp.lt.s32.totalorder %s32_s22, %s32_s22 }
  0x72   :  { %p4254_p9 = scmp.ne.s32.totalorder %s32_s22, %s4253_s19  ;;  %p4259_p11 = scmp.lt.s32.totalorder %s4253_s19, %s4253_s19 }
  0x74   :  { %p4260_p12 = por %p4259_p11, %p4258_p10 }
  0x76   :  { %p4261_p13 = pnand %p4260_p12, %p4254_p9 }
  0x78   :  { %4264 = shalt.err (!%p4261_p13)
}
  0x79   :  { %s4444_s11 = smov 32   ;;  %s4445_s15 = smov 2  }
  0x7a   :  { %37 = dma.hbm_to_vmem [thread:$0]  %s5439_s0, 256, %s32_s22, [#allocation3], %s4444_s11, %s4444_s11, %s4445_s15  }
  0x7b   :  { %s4446_s27 = smov [#allocation7]   ;;  %s4265_s29 = scalar_lea.hbm %s5441_s2, 1536 }
  0x7c   :  { %s55_s5 = sshll.u32 %s4446_s27, 4  ;;  %p4266_p0 = scmp.ne.s32.totalorder %s5441_s2, %s4265_s29  ;;  %s56_s5 = int_to_ptr.vmem [resolvable:$true] %s55_s5 }
  0x7d   :  { %p4269_p1 = scmp.lt.u32.totalorder %s4265_s29, %s5441_s2 }
  0x7f   :  { %p4271_p2 = pnand %p4269_p1, %p4266_p0 }
  0x81   :  { %4274 = shalt.err (!%p4271_p2)
}
  0x82   :  { %s4275_s23 = scalar_lea.vmem %s56_s5, 1536  ;;  %p4280_p4 = scmp.lt.s32.totalorder %s56_s5, %s56_s5 }
  0x83   :  { %p4276_p3 = scmp.ne.s32.totalorder %s56_s5, %s4275_s23  ;;  %p4281_p5 = scmp.lt.s32.totalorder %s4275_s23, %s4275_s23 }
  0x85   :  { %p4282_p6 = por %p4281_p5, %p4280_p4 }
  0x87   :  { %p4283_p7 = pnand %p4282_p6, %p4276_p3 }
  0x89   :  { %4286 = shalt.err (!%p4283_p7)
}
  0x8a   :  { %s4447_s0 = smov 128   ;;  %s4448_s22 = smov 8  }
  0x8b   :  { %61 = dma.hbm_to_vmem [thread:$0]  %s5441_s2, 1536, %s56_s5, [#allocation6], %s4447_s0, %s4447_s0, %s4448_s22  }
  0x8c   :  { %s4449_s26 = smov [#allocation10]   ;;  %s4450_s20 = smov [#allocation13]  }
  0x8d   :  { %s80_s17 = sshll.u32 %s4449_s26, 4  ;;  %s102_s7 = sshll.u32 %s4450_s20, 4  ;;  %s81_s17 = int_to_ptr.vmem [resolvable:$true] %s80_s17  ;;  %s103_s7 = int_to_ptr.vmem [resolvable:$true] %s102_s7 }
  0x8e   :  { %s4287_s21 = scalar_lea.hbm %s5443_s4, 16 }
  0x8f   :  { %p4288_p8 = scmp.ne.s32.totalorder %s5443_s4, %s4287_s21  ;;  %p4291_p9 = scmp.lt.u32.totalorder %s4287_s21, %s5443_s4 }
  0x91   :  { %p4293_p10 = pnand %p4291_p9, %p4288_p8 }
  0x93   :  { %4296 = shalt.err (!%p4293_p10)
}
  0x94   :  { %s4297_s2 = scalar_lea.vmem %s81_s17, 16  ;;  %s4301_s5 = scalar_lea.vmem %s81_s17, 32 }
  0x95   :  { %p4298_p11 = scmp.ne.s32.totalorder %s81_s17, %s4297_s2  ;;  %p4302_p12 = scmp.lt.s32.totalorder %s81_s17, %s81_s17 }
  0x96   :  { %p4303_p13 = scmp.lt.s32.totalorder %s4301_s5, %s4297_s2 }
  0x98   :  { %p4304_p0 = por %p4303_p13, %p4302_p12 }
  0x9a   :  { %p4305_p1 = pnand %p4304_p0, %p4298_p11 }
  0x9c   :  { %4308 = shalt.err (!%p4305_p1)
}
  0x9d   :  { %83 = dma.hbm_to_vmem [thread:$0]  %s5443_s4, 16, %s81_s17, [#allocation9]  }
  0x9e   :  { %s4309_s3 = scalar_lea.hbm %s5445_s6, 16 }
  0x9f   :  { %p4310_p2 = scmp.ne.s32.totalorder %s5445_s6, %s4309_s3  ;;  %p4313_p3 = scmp.lt.u32.totalorder %s4309_s3, %s5445_s6 }
  0xa1   :  { %p4315_p4 = pnand %p4313_p3, %p4310_p2 }
  0xa3   :  { %4318 = shalt.err (!%p4315_p4)
}
  0xa4   :  { %s4319_s16 = scalar_lea.vmem %s103_s7, 16  ;;  %s4323_s26 = scalar_lea.vmem %s103_s7, 32 }
  0xa5   :  { %p4320_p5 = scmp.ne.s32.totalorder %s103_s7, %s4319_s16  ;;  %p4324_p6 = scmp.lt.s32.totalorder %s103_s7, %s103_s7 }
  0xa6   :  { %p4325_p7 = scmp.lt.s32.totalorder %s4323_s26, %s4319_s16 }
  0xa8   :  { %p4326_p8 = por %p4325_p7, %p4324_p6 }
  0xaa   :  { %p4327_p9 = pnand %p4326_p8, %p4320_p5 }
  0xac   :  { %4330 = shalt.err (!%p4327_p9)
}
  0xad   :  { %105 = dma.hbm_to_vmem [thread:$0]  %s5445_s6, 16, %s103_s7, [#allocation12]  }
  0xae   :  { %s4451_s20 = smov [#allocation16]   ;;  %s4452_s19 = smov [#allocation19]  }
  0xaf   :  { %s124_s18 = sshll.u32 %s4451_s20, 4  ;;  %s144_s21 = sshll.u32 %s4452_s19, 4  ;;  %s125_s18 = int_to_ptr.vmem [resolvable:$true] %s124_s18  ;;  %s145_s21 = int_to_ptr.vmem [resolvable:$true] %s144_s21 }
  0xb0   :  { %s4331_s25 = scalar_lea.hbm %s5447_s8, 16 }
  0xb1   :  { %p4332_p10 = scmp.ne.s32.totalorder %s5447_s8, %s4331_s25  ;;  %p4335_p11 = scmp.lt.u32.totalorder %s4331_s25, %s5447_s8 }
  0xb3   :  { %p4337_p12 = pnand %p4335_p11, %p4332_p10 }
  0xb5   :  { %4340 = shalt.err (!%p4337_p12)
}
  0xb6   :  { %s4341_s6 = scalar_lea.vmem %s125_s18, 16  ;;  %s4345_s7 = scalar_lea.vmem %s125_s18, 32 }
  0xb7   :  { %p4342_p13 = scmp.ne.s32.totalorder %s125_s18, %s4341_s6  ;;  %p4346_p0 = scmp.lt.s32.totalorder %s125_s18, %s125_s18 }
  0xb8   :  { %p4347_p1 = scmp.lt.s32.totalorder %s4345_s7, %s4341_s6 }
  0xba   :  { %p4348_p2 = por %p4347_p1, %p4346_p0 }
  0xbc   :  { %p4349_p3 = pnand %p4348_p2, %p4342_p13 }
  0xbe   :  { %4352 = shalt.err (!%p4349_p3)
}
  0xbf   :  { %127 = dma.hbm_to_vmem [thread:$0]  %s5447_s8, 16, %s125_s18, [#allocation15]  }
  0xc0   :  { %s4353_s23 = scalar_lea.hbm %s5449_s10, 16 }
  0xc1   :  { %p4354_p4 = scmp.ne.s32.totalorder %s5449_s10, %s4353_s23  ;;  %p4357_p5 = scmp.lt.u32.totalorder %s4353_s23, %s5449_s10 }
  0xc3   :  { %p4359_p6 = pnand %p4357_p5, %p4354_p4 }
  0xc5   :  { %4362 = shalt.err (!%p4359_p6)
}
  0xc6   :  { %s4363_s26 = scalar_lea.vmem %s145_s21, 16  ;;  %s4367_s4 = scalar_lea.vmem %s145_s21, 32 }
  0xc7   :  { %p4364_p7 = scmp.ne.s32.totalorder %s145_s21, %s4363_s26  ;;  %p4368_p8 = scmp.lt.s32.totalorder %s145_s21, %s145_s21 }
  0xc8   :  { %p4369_p9 = scmp.lt.s32.totalorder %s4367_s4, %s4363_s26 }
  0xca   :  { %p4370_p10 = por %p4369_p9, %p4368_p8 }
  0xcc   :  { %p4371_p11 = pnand %p4370_p10, %p4364_p7 }
  0xce   :  { %4374 = shalt.err (!%p4371_p11)
}
  0xcf   :  { %147 = dma.hbm_to_vmem [thread:$0]  %s5449_s10, 16, %s145_s21, [#allocation18]  }
  0xd0   :  { %s4453_s20 = smov [#allocation22]   ;;  %s4375_s27 = scalar_lea.hbm %s5451_s12, 16 }
  0xd1   :  { %s164_s18 = sshll.u32 %s4453_s20, 4  ;;  %p4376_p12 = scmp.ne.s32.totalorder %s5451_s12, %s4375_s27  ;;  %s165_s18 = int_to_ptr.vmem [resolvable:$true] %s164_s18 }
  0xd2   :  { %p4379_p13 = scmp.lt.u32.totalorder %s4375_s27, %s5451_s12 }
  0xd4   :  { %p4381_p0 = pnand %p4379_p13, %p4376_p12 }
  0xd6   :  { %4384 = shalt.err (!%p4381_p0)
}
  0xd7   :  { %s4385_s29 = scalar_lea.vmem %s165_s18, 16  ;;  %s4389_s10 = scalar_lea.vmem %s165_s18, 32 }
  0xd8   :  { %p4386_p1 = scmp.ne.s32.totalorder %s165_s18, %s4385_s29  ;;  %p4390_p2 = scmp.lt.s32.totalorder %s165_s18, %s165_s18 }
  0xd9   :  { %p4391_p3 = scmp.lt.s32.totalorder %s4389_s10, %s4385_s29 }
  0xdb   :  { %p4392_p4 = por %p4391_p3, %p4390_p2 }
  0xdd   :  { %p4393_p5 = pnand %p4392_p4, %p4386_p1 }
  0xdf   :  { %4396 = shalt.err (!%p4393_p5)
}
  0xe0   :  { %167 = dma.hbm_to_vmem [thread:$0]  %s5451_s12, 16, %s165_s18, [#allocation21]  }
  0xe1   :  { %4419 = dma.done.wait [#allocation3], 256  }
  0xe2   :  { %4420 = vsyncadd [#allocation3], 4294967040 }
  0xe3   :  { %4421 = dma.done.wait [#allocation6], 2304  }
  0xe4   :  { %4422 = vsyncadd [#allocation6], 4294964992 }
  0xe5   :  { %4423 = dma.done.wait [#allocation9], 272  }
  0xe6   :  { %4424 = vsyncadd [#allocation9], 4294967024 }
  0xe7   :  { %4425 = dma.done.wait [#allocation12], 272  }
  0xe8   :  { %4426 = vsyncadd [#allocation12], 4294967024 }
  0xe9   :  { %4427 = dma.done.wait [#allocation15], 528  }
  0xea   :  { %4428 = vsyncadd [#allocation15], 4294966768 }
  0xeb   :  { %4429 = dma.done.wait [#allocation18], 32  }
  0xec   :  { %4430 = vsyncadd [#allocation18], 4294967264 }
  0xed   :  { %4431 = dma.done.wait [#allocation21], 32  }
  0xee   :  { %4432 = vsyncadd [#allocation21], 4294967264  ;;  %vm272_vm0 = vcmask 1041409   ;;  %vm275_vm1 = vcmask 1042434   ;;  %vm278_vm2 = vcmask 1043459   ;;  %vm281_vm3 = vcmask 1044484  }
  0xef   :  { %vm284_vm4 = vcmask 1045509   ;;  %vm287_vm5 = vcmask 1046534   ;;  %v4699_v0 = vld [vmem:[#allocation2] sm:$0x1]  ;;  %v4701_v1 = vld [vmem:[#allocation2 + $0x2] sm:$0x1] }
  0xf0   :  { %v4703_v2 = vld [vmem:[#allocation2 + $0x4] sm:$0x1]  ;;  %v4705_v3 = vld [vmem:[#allocation2 + $0x6] sm:$0x1]  ;;  %v4707_v4 = vld [vmem:[#allocation2 + $0x8] sm:$0x1] }
  0xf1   :  { %v4709_v5 = vld [vmem:[#allocation2 + $0xa] sm:$0x1]  ;;  %v4711_v6 = vld [vmem:[#allocation2 + $0xc] sm:$0x1]  ;;  %v4713_v7 = vld [vmem:[#allocation2 + $0xe] sm:$0x1] }
  0xf2   :  { %v271_v8 = vrot.slane %v4701_v1, 7  ;;  %v274_v9 = vrot.slane %v4703_v2, 6  ;;  %v277_v10 = vrot.slane %v4705_v3, 5  ;;  %v280_v11 = vrot.slane %v4707_v4, 4  ;;  %v4730_v22 = vld [vmem:[#allocation5] sm:$0xff]   ;;  %v220_v23 = vld [vmem:[#allocation7] sm:$0xff] }
  0xf3   :  { %v283_v12 = vrot.slane %v4709_v5, 3  ;;  %vm290_vm6 = vcmask 1047559   ;;  %v286_v14 = vrot.slane %v4711_v6, 2  ;;  %v289_v15 = vrot.slane %v4713_v7, 1  ;;  %v225_v25 = vld [vmem:[#allocation7 + $0x28] sm:$0xff]  ;;  %v226_v27 = vld [vmem:[#allocation7 + $0x30] sm:$0xff] }
  0xf4   :  { %v273_v13 = vsel %vm272_vm0, %v271_v8, %v4699_v0  ;;  %vm417_vm7 = vcmask 261120   ;;  %v4454_v24 = vmov 0   ;;  %v221_v26 = vld [vmem:[#allocation7 + $0x8] sm:$0xff]  ;;  %v227_v28 = vld [vmem:[#allocation7 + $0x38] sm:$0xff]  ;;  %v222_v29 = vld [vmem:[#allocation7 + $0x10] sm:$0xff]  ;;  %v5453_v8 = vmov 0.0  }
  0xf5   :  { %v276_v16 = vsel %vm275_vm1, %v274_v9, %v273_v13  ;;  %3820 = vmatprep.mubr.msk.bf16.mxu0 %vm417_vm7, %v4730_v22  ;;  %4028 = vset.pattern.permute.xlu1 %v4454_v24  ;;  %v223_v30 = vld [vmem:[#allocation7 + $0x18] sm:$0xff]  ;;  %v224_v31 = vld [vmem:[#allocation7 + $0x20] sm:$0xff]  ;;  %v4742_v40 = vld [vmem:[#allocation5 + $0x18] sm:$0xff]   ;;  %vm4456_vm8 = vmmov 0   ;;  %vm913_vm9 = vcmask 64512   ;;  %vm1149_vm10 = vcmask 1043456  }
  0xf6   :  { %v279_v17 = vsel %vm278_vm2, %v277_v10, %v276_v16  ;;  %329 = vperm.xlu1 %4028, %v220_v23   ;;  %v4734_v38 = vld [vmem:[#allocation5 + $0x8] sm:$0xff]   ;;  %v4736_v39 = vld [vmem:[#allocation5 + $0x10] sm:$0xff]   ;;  %v4746_v41 = vld [vmem:[#allocation5 + $0x20] sm:$0xff]   ;;  %vm1850_vm11 = vcmask 523264   ;;  %vm2058_vm12 = vcmask 253952   ;;  %s4457_s12 = smov [#allocation23]  }
  0xf7   :  { %v282_v18 = vsel %vm281_vm3, %v280_v11, %v279_v17  ;;  %v4748_v42 = vld [vmem:[#allocation5 + $0x28] sm:$0xff]   ;;  %3828 = vmatprep.mubr.msk.bf16.mxu1 %vm417_vm7, %v4746_v41  ;;  %s3673_s7 = sshll.u32 %s4457_s12, 4  ;;  %s3674_s7 = int_to_ptr.vmem [resolvable:$true] %s3673_s7 }
  0xf8   :  { %v285_v19 = vsel %vm284_vm4, %v283_v12, %v282_v18  ;;  %s4397_s30 = scalar_lea.vmem %s3674_s7, 256  ;;  %p4402_p7 = scmp.lt.s32.totalorder %s3674_s7, %s3674_s7 }
  0xf9   :  { %v288_v20 = vsel %vm287_vm5, %v286_v14, %v285_v19  ;;  %p4398_p6 = scmp.ne.s32.totalorder %s3674_s7, %s4397_s30  ;;  %p4403_p8 = scmp.lt.s32.totalorder %s4397_s30, %s4397_s30 }
  0xfa   :  { %v291_v21 = vsel %vm290_vm6, %v289_v15, %v288_v20  ;;  %354 = vperm.xlu1 %4028, %v225_v25  }
  0xfb   :  { %293 = vxpose.xlu0.b32.start.end [1/1] (short) (narrow) %v291_v21, 32  ;;  %p4404_p9 = por %p4403_p8, %p4402_p7 }
  0xfd   :  { %p4405_p10 = pnand %p4404_p9, %p4398_p6 }
  0xfe   :  { %334 = vperm.xlu1 %4028, %v221_v26  }
 0x102   :  { %359 = vperm.xlu1 %4028, %v226_v27  }
 0x106   :  { %364 = vperm.xlu1 %4028, %v227_v28  }
 0x10a   :  { %339 = vperm.xlu1 %4028, %v222_v29  }
 0x10e   :  { %344 = vperm.xlu1 %4028, %v223_v30  }
 0x124   :  { %4027 = vset.pattern.permute.xlu0 %v4454_v24 }
 0x130   :  { %349 = vperm.xlu0 %4027, %v224_v31  }
 0x175   :  { %v4754_v43 = vpop.permute.xlu1 %329 }
 0x179   :  { %v4756_v44 = vpop.permute.xlu1 %354 }
 0x17b   :  { %v309_v32 = vpop.trf.xlu0 }
 0x17d   :  { %v4758_v45 = vpop.permute.xlu1 %334 }
 0x17f   :  { %v310_v33 = vpop.trf.xlu0 }
 0x180   :  { %v325_v34 = vpack.c.bf16 %v310_v33, %v309_v32 }
 0x181   :  { %v4760_v50 = vpop.permute.xlu1 %359 }
 0x182   :  { %3816 = vmatprep.subr.bf16.mxu0 %v325_v34  ;;  %4000 = vmatprep.subr.bf16.mxu1 %v325_v34 }
 0x183   :  { %3817 = vmatpush3.bf16.msra.mxu0 %v325_v34  ;;  %4002 = vmatpush3.bf16.msra.mxu1 %v325_v34  ;;  %v311_v35 = vpop.trf.xlu0 }
 0x185   :  { %v4767_v58 = vpop.permute.xlu1 %364 }
 0x187   :  { %v312_v36 = vpop.trf.xlu0 }
 0x188   :  { %v326_v37 = vpack.c.bf16 %v312_v36, %v311_v35 }
 0x189   :  { %v4773_v9 = vpop.permute.xlu1 %339 }
 0x18a   :  { %3818 = vmatprep.subr.bf16.mxu0 %v326_v37  ;;  %4001 = vmatprep.subr.bf16.mxu1 %v326_v37 }
 0x18b   :  { %3819 = vmatpush3.bf16.msra.mxu0 %v326_v37  ;;  %4003 = vmatpush3.bf16.msra.mxu1 %v326_v37 }
 0x18c   :  { %3832 = vmatprep.subr.bf16.mxu1 %v5453_v8  ;;  %3850 = vmatprep.subr.bf16.mxu0 %v5453_v8 }
 0x18d   :  { %v4781_v12 = vpop.permute.xlu1 %344 }
 0x18e   :  { %3821 = vmatmul.mubr.msk.bf16.vlgmr.msra.gmra.mrb[0].mxu0 %vm417_vm7, %v4734_v38  ;;  %3829 = vmatmul.mubr.msk.bf16.vlgmr.msra.gmra.mrb[0].mxu1 %vm417_vm7, %v4748_v42 }
 0x18f   :  { %3824 = vmatprep.mubr.msk.bf16.mxu0 %vm417_vm7, %v4736_v39  ;;  %3834 = vmatprep.mubr.msk.bf16.mxu1 %vm4456_vm8, %v5453_v8 }
 0x196   :  { %3825 = vmatmul.mubr.msk.bf16.gmra.mrb[4].mxu0 %vm417_vm7, %v4742_v40 }
 0x197   :  { %3852 = vmatprep.mubr.msk.bf16.mxu0 %vm4456_vm8, %v5453_v8 }
 0x1af   :  { %v4762_v51 = vpop.permute.xlu0 %349 }
 0x261   :  { %v3822_v46 = vpop.f32.mrb[0].mxu0  ;;  %v4784_v14 = vpop.f32.mrb[0].mxu1 }
 0x262   :  { %v470_v47 = vpop.f32.mrb[1].mxu0  ;;  %v479_v11 = vadd.f32 %v3822_v46, %v4773_v9  ;;  %v4786_v15 = vpop.f32.mrb[1].mxu1 }
 0x263   :  { %v3823_v48 = vpop.f32.mrb[2].mxu0  ;;  %v471_v61 = vadd.f32 %v470_v47, %v4754_v43  ;;  %v4788_v16 = vpop.f32.mrb[2].mxu1 }
 0x264   :  { %v473_v49 = vpop.f32.mrb[3].mxu0  ;;  %v482_v13 = vadd.f32 %v3823_v48, %v4781_v12  ;;  %v4790_v17 = vpop.f32.mrb[3].mxu1 }
 0x265   :  { %v474_v53 = vadd.f32 %v473_v49, %v4758_v45 }
 0x269   :  { %v3826_v52 = vpop.f32.mrb[4].mxu0 }
 0x26a   :  { %v495_v54 = vadd.f32 %v3826_v52, %v4760_v50  ;;  %v486_v55 = vpop.f32.mrb[5].mxu0 }
 0x26b   :  { %v487_v56 = vadd.f32 %v486_v55, %v4762_v51  ;;  %v3827_v57 = vpop.f32.mrb[6].mxu0 }
 0x26c   :  { %v4036_v59 = vpack.i.bf16 %v495_v54, %v474_v53  ;;  %v489_v60 = vpop.f32.mrb[7].mxu0  ;;  %v498_v10 = vadd.f32 %v3827_v57, %v4767_v58 }
 0x26d   :  { %v490_v62 = vadd.f32 %v489_v60, %v4756_v44  ;;  %649 = vxpose.xlu1.b32.start.end [1/1] (short) (narrow) %v487_v56, 8 }
 0x26f   :  { %v4029_v63 = vpack.i.bf16 %v490_v62, %v471_v61 }
 0x271   :  { %4037 = vxpose.xlu1.b32.start.end [1/1] (short) (narrow) %v4036_v59, 8  ;;  %4030 = vxpose.xlu0.b32.start.end [1/1] (short) (narrow) %v4029_v63, 8 }
 0x275   :  { %745 = vxpose.xlu1.b32.start.end [1/1] (short) (narrow) %v498_v10, 8 }
 0x279   :  { %581 = vxpose.xlu1.b32.start.end [1/1] (short) (narrow) %v479_v11, 8 }
 0x27d   :  { %613 = vxpose.xlu1.b32.start.end [1/1] (short) (narrow) %v482_v13, 8 }
 0x2ed   :  { %v665_v18 = vpop.trf.xlu1 }
 0x2ee   :  { %v777_v19 = vpack.c.bf16 %v665_v18, %v665_v18 }
 0x2f0   :  { %v918_v20 = vsel %vm913_vm9, %v777_v19, 0 }
 0x2f1   :  { %3833 = vmatpush3.bf16.xpose.msra.mxu1 %v918_v20  ;;  %v4031_v21 = vpop.trf.xlu0  ;;  %v4038_v23 = vpop.trf.xlu1 }
 0x2f2   :  { %v4035_v24 = vunpack.i.h.bf16 %v4031_v21  ;;  %v4032_v25 = vunpack.i.l.bf16 %v4031_v21  ;;  %3838 = vmatprep.subr.bf16.mxu1 %v5453_v8  ;;  %v4042_v30 = vunpack.i.h.bf16 %v4038_v23  ;;  %v4039_v32 = vunpack.i.l.bf16 %v4038_v23 }
 0x2f4   :  { %v645_v26 = vpack.c.bf16 %v4032_v25, %v4032_v25  ;;  %v778_v27 = vpack.c.bf16 %v4035_v24, %v4035_v24  ;;  %v779_v35 = vpack.c.bf16 %v4042_v30, %v4042_v30  ;;  %v646_v36 = vpack.c.bf16 %v4039_v32, %v4039_v32  ;;  %v228_v24 = vld [vmem:[#allocation7 + $0x40] sm:$0xff]  ;;  %v229_v25 = vld [vmem:[#allocation7 + $0x48] sm:$0xff] }
 0x2f5   :  { %v761_v28 = vpop.trf.xlu1 }
 0x2f6   :  { %v964_v29 = vsel %vm913_vm9, %v778_v27, 0  ;;  %v780_v31 = vpack.c.bf16 %v761_v28, %v761_v28  ;;  %v1010_v46 = vsel %vm913_vm9, %v779_v35, 0  ;;  %v231_v27 = vld [vmem:[#allocation7 + $0x58] sm:$0xff] }
 0x2f8   :  { %3835 = vmatmul.mubr.msk.bf16.vlgmr.msra.gmra.mrb[4].mxu1 %vm913_vm9, %v645_v26  ;;  %v1056_v33 = vsel %vm913_vm9, %v780_v31, 0  ;;  %v230_v26 = vld [vmem:[#allocation7 + $0x50] sm:$0xff] }
 0x2f9   :  { %3839 = vmatpush3.bf16.xpose.msra.mxu1 %v964_v29  ;;  %3840 = vmatprep.mubr.msk.bf16.mxu1 %vm4456_vm8, %v5453_v8  ;;  %v597_v34 = vpop.trf.xlu1 }
 0x2fa   :  { %3844 = vmatprep.subr.bf16.mxu1 %v5453_v8  ;;  %3851 = vmatpush3.bf16.xpose.msra.mxu0 %v1056_v33  ;;  %v647_v48 = vpack.c.bf16 %v597_v34, %v597_v34 }
 0x2fb   :  { %3862 = vmatprep.subr.bf16.mxu0 %v5453_v8 }
 0x2fd   :  { %v629_v37 = vpop.trf.xlu1 }
 0x2fe   :  { %v648_v47 = vpack.c.bf16 %v629_v37, %v629_v37 }
 0x300   :  { %3841 = vmatmul.mubr.msk.bf16.vlgmr.msra.gmra.mrb[8].mxu1 %vm913_vm9, %v646_v36 }
 0x301   :  { %3845 = vmatpush3.bf16.xpose.msra.mxu1 %v1010_v46  ;;  %3846 = vmatprep.mubr.msk.bf16.mxu1 %vm4456_vm8, %v5453_v8 }
 0x302   :  { %3853 = vmatmul.mubr.msk.bf16.vlgmr.msra.gmra.mrb[8].mxu0 %vm913_vm9, %v648_v47  ;;  %3856 = vmatprep.subr.bf16.mxu1 %v5453_v8 }
 0x303   :  { %3864 = vmatprep.mubr.msk.bf16.mxu0 %vm4456_vm8, %v5453_v8 }
 0x308   :  { %3847 = vmatmul.mubr.msk.bf16.vlgmr.msra.gmra.mrb[12].mxu1 %vm913_vm9, %v647_v48 }
 0x309   :  { %3858 = vmatprep.mubr.msk.bf16.mxu1 %vm4456_vm8, %v5453_v8 }
 0x3cb   :  { %v954_v49 = vpop.f32.mrb[4].mxu1 }
 0x3cc   :  { %v3836_v52 = vpop.f32.mrb[5].mxu1  ;;  %v1098_v53 = vsel %vm913_vm9, %v954_v49, -inf }
 0x3cd   :  { %1099 = vmax.xlane.f32.xlu1 %v1098_v53  ;;  %v957_v54 = vpop.f32.mrb[6].mxu1 }
 0x3ce   :  { %v3837_v55 = vpop.f32.mrb[7].mxu1 }
 0x3d3   :  { %v1000_v56 = vpop.f32.mrb[8].mxu1 }
 0x3d4   :  { %v3842_v57 = vpop.f32.mrb[9].mxu1  ;;  %v1101_v59 = vsel %vm913_vm9, %v1000_v56, -inf }
 0x3d5   :  { %1102 = vmax.xlane.f32.xlu0 %v1101_v59  ;;  %v1003_v60 = vpop.f32.mrb[10].mxu1  ;;  %v1092_v61 = vpop.f32.mrb[8].mxu0 }
 0x3d6   :  { %v3843_v62 = vpop.f32.mrb[11].mxu1  ;;  %v3854_v63 = vpop.f32.mrb[9].mxu0  ;;  %v1107_v21 = vsel %vm913_vm9, %v1092_v61, -inf }
 0x3d7   :  { %v1095_v10 = vpop.f32.mrb[10].mxu0 }
 0x3d8   :  { %v3855_v11 = vpop.f32.mrb[11].mxu0 }
 0x3db   :  { %v1046_v13 = vpop.f32.mrb[12].mxu1 }
 0x3dc   :  { %v1104_v18 = vsel %vm913_vm9, %v1046_v13, -inf  ;;  %v3848_v19 = vpop.f32.mrb[13].mxu1 }
 0x3dd   :  { %1105 = vmax.xlane.f32.xlu1 %v1104_v18  ;;  %v1049_v20 = vpop.f32.mrb[14].mxu1 }
 0x3de   :  { %v3849_v23 = vpop.f32.mrb[15].mxu1 }
 0x3e1   :  { %1108 = vmax.xlane.f32.xlu1 %v1107_v21 }
 0x3eb   :  { %369 = vperm.xlu0 %4027, %v228_v24  }
 0x3f2   :  { %374 = vperm.xlu1 %4028, %v229_v25  }
 0x3f6   :  { %379 = vperm.xlu1 %4028, %v230_v26  }
 0x3fa   :  { %384 = vperm.xlu1 %4028, %v231_v27  }
 0x45a   :  { %v1100_v35 = vpop.xlane.xlu1 %1099 }
 0x45b   :  { %v1110_v37 = vsub.f32 %v954_v49, %v1100_v35 }
 0x45d   :  { %v1114_v47 = vmul.f32 1.442695, %v1110_v37 }
 0x462   :  { %v1103_v28 = vpop.xlane.xlu0 %1102 }
 0x463   :  { %v1111_v29 = vsub.f32 %v1000_v56, %v1103_v28 }
 0x465   :  { %v1116_v30 = vmul.f32 1.442695, %v1111_v29 }
 0x467   :  { %4071 = vpow2.f32 %v1116_v30 }
 0x468   :  { %4073 = vpow2.f32 %v1114_v47 }
 0x46a   :  { %v4816_v31 = vpop.permute.xlu0 %369  ;;  %v1106_v36 = vpop.xlane.xlu1 %1105 }
 0x46b   :  { %v503_v32 = vadd.f32 %v4786_v15, %v4816_v31  ;;  %v1112_v52 = vsub.f32 %v1046_v13, %v1106_v36 }
 0x46d   :  { %781 = vxpose.xlu0.b32.start.end [1/1] (short) (narrow) %v503_v32, 8  ;;  %v1118_v54 = vmul.f32 1.442695, %v1112_v52 }
 0x46e   :  { %v1109_v46 = vpop.xlane.xlu1 %1108 }
 0x46f   :  { %v1113_v48 = vsub.f32 %v1092_v61, %v1109_v46 }
 0x471   :  { %v4072_v33 = vpop.eup %4071  ;;  %v1120_v53 = vmul.f32 1.442695, %v1113_v48 }
 0x472   :  { %v1125_v34 = vsel %vm913_vm9, %v4072_v33, 0.0  ;;  %v4074_v55 = vpop.eup %4073  ;;  %v4823_v60 = vpop.permute.xlu1 %374 }
 0x473   :  { %1126 = vadd.xlane.f32.xlu1 %v1125_v34  ;;  %4075 = vpow2.f32 %v1120_v53  ;;  %v1122_v15 = vsel %vm913_vm9, %v4074_v55, 0.0  ;;  %v506_v61 = vadd.f32 %v4790_v17, %v4823_v60 }
 0x474   :  { %4077 = vpow2.f32 %v1118_v54 }
 0x476   :  { %v4828_v62 = vpop.permute.xlu1 %379 }
 0x477   :  { %v511_v63 = vadd.f32 %v4784_v14, %v4828_v62 }
 0x47a   :  { %v4832_v10 = vpop.permute.xlu1 %384 }
 0x47b   :  { %v514_v11 = vadd.f32 %v4788_v16, %v4832_v10 }
 0x47d   :  { %v4076_v56 = vpop.eup %4075 }
 0x47e   :  { %v1131_v57 = vsel %vm913_vm9, %v4076_v56, 0.0  ;;  %v4078_v59 = vpop.eup %4077 }
 0x47f   :  { %v1128_v49 = vsel %vm913_vm9, %v4078_v59, 0.0 }
 0x49a   :  { %1123 = vadd.xlane.f32.xlu0 %v1122_v15 }
 0x49e   :  { %1132 = vadd.xlane.f32.xlu0 %v1131_v57 }
 0x4a2   :  { %1129 = vadd.xlane.f32.xlu0 %v1128_v49 }
 0x4a6   :  { %813 = vxpose.xlu1.b32.start.end [1/1] (short) (narrow) %v506_v61, 8 }
 0x4cf   :  { %845 = vxpose.xlu0.b32.start.end [1/1] (short) (narrow) %v511_v63, 8 }
 0x4d3   :  { %877 = vxpose.xlu0.b32.start.end [1/1] (short) (narrow) %v514_v11, 8 }
 0x4ed   :  { %v797_v13 = vpop.trf.xlu0 }
 0x4ee   :  { %v909_v18 = vpack.c.bf16 %v797_v13, %v797_v13 }
 0x4f0   :  { %v1151_v19 = vsel %vm1149_vm10, %v909_v18, 0 }
 0x4f1   :  { %3857 = vmatpush3.bf16.msra.mxu1 %v1151_v19 }
 0x4f2   :  { %3868 = vmatprep.subr.bf16.mxu1 %v5453_v8 }
 0x500   :  { %v1127_v17 = vpop.xlane.xlu1 %1126 }
 0x501   :  { %4079 = vrcp.f32 %v1127_v17 }
 0x50b   :  { %v4080_v20 = vpop.eup %4079 }
 0x50c   :  { %v1139_v14 = vmul.f32 %v4080_v20, %v4072_v33 }
 0x50e   :  { %v1143_v16 = vpack.c.bf16 %v1139_v14, %v1139_v14  ;;  %v4856_v14 = vld [vmem:[#allocation8] sm:$0xff]  }
 0x526   :  { %v829_v21 = vpop.trf.xlu1 }
 0x527   :  { %v910_v23 = vpack.c.bf16 %v829_v21, %v829_v21  ;;  %v1124_v24 = vpop.xlane.xlu0 %1123 }
 0x528   :  { %4081 = vrcp.f32 %v1124_v24  ;;  %v4859_v24 = vld [vmem:[#allocation8 + $0x8] sm:$0xff]  }
 0x529   :  { %v1197_v25 = vsel %vm1149_vm10, %v910_v23, 0 }
 0x52a   :  { %3863 = vmatpush3.bf16.msra.mxu0 %v1197_v25 }
 0x52b   :  { %3874 = vmatprep.subr.bf16.mxu0 %v5453_v8  ;;  %v1133_v29 = vpop.xlane.xlu0 %1132 }
 0x52d   :  { %3865 = vmatmul.mubr.msk.bf16.vlgmr.msra.gmra.mrb[12].mxu0 %vm913_vm9, %v1143_v16 }
 0x52e   :  { %3876 = vmatprep.mubr.msk.bf16.mxu0 %vm4456_vm8, %v5453_v8 }
 0x52f   :  { %v1130_v30 = vpop.xlane.xlu0 %1129 }
 0x530   :  { %4083 = vrcp.f32 %v1130_v30  ;;  %v4867_v30 = vld [vmem:[#allocation10] ss:$0 sm:$0xff] }
 0x531   :  { %4085 = vrcp.f32 %v1133_v29 }
 0x532   :  { %v4082_v26 = vpop.eup %4081 }
 0x533   :  { %v1138_v27 = vmul.f32 %v4082_v26, %v4074_v55 }
 0x535   :  { %v1142_v28 = vpack.c.bf16 %v1138_v27, %v1138_v27 }
 0x537   :  { %3859 = vmatmul.mubr.msk.bf16.vlgmr.msra.gmra.mrb[16].mxu1 %vm913_vm9, %v1142_v28 }
 0x538   :  { %3870 = vmatprep.mubr.msk.bf16.mxu1 %vm4456_vm8, %v5453_v8 }
 0x53a   :  { %v4084_v32 = vpop.eup %4083 }
 0x53b   :  { %v1140_v34 = vmul.f32 %v4084_v32, %v4078_v59  ;;  %v4086_v36 = vpop.eup %4085 }
 0x53c   :  { %v1141_v47 = vmul.f32 %v4086_v36, %v4076_v56 }
 0x53d   :  { %v1144_v52 = vpack.c.bf16 %v1140_v34, %v1140_v34 }
 0x53e   :  { %v1145_v54 = vpack.c.bf16 %v1141_v47, %v1141_v47 }
 0x54f   :  { %v861_v33 = vpop.trf.xlu0 }
 0x550   :  { %v911_v35 = vpack.c.bf16 %v861_v33, %v861_v33 }
 0x552   :  { %v1243_v37 = vsel %vm1149_vm10, %v911_v35, 0 }
 0x553   :  { %3869 = vmatpush3.bf16.msra.mxu1 %v1243_v37  ;;  %v893_v46 = vpop.trf.xlu0 }
 0x554   :  { %v912_v48 = vpack.c.bf16 %v893_v46, %v893_v46  ;;  %3880 = vmatprep.subr.bf16.mxu1 %v5453_v8 }
 0x556   :  { %v1289_v53 = vsel %vm1149_vm10, %v912_v48, 0  ;;  %3871 = vmatmul.mubr.msk.bf16.vlgmr.msra.gmra.mrb[20].mxu1 %vm913_vm9, %v1144_v52 }
 0x557   :  { %3875 = vmatpush3.bf16.msra.mxu0 %v1289_v53  ;;  %3884 = vmatprep.mubr.msk.bf16.mxu1 %vm4456_vm8, %v5453_v8 }
 0x558   :  { %3888 = vmatprep.subr.bf16.mxu0 %v5453_v8  ;;  %3881 = vmatpush3.bf16.msra.mxu1 %v4856_v14 }
 0x559   :  { %3882 = vmatprep.subr.bf16.mxu1 %v5453_v8 }
 0x55a   :  { %3877 = vmatmul.mubr.msk.bf16.vlgmr.msra.gmra.mrb[16].mxu0 %vm913_vm9, %v1145_v54 }
 0x55b   :  { %3892 = vmatprep.mubr.msk.bf16.mxu0 %vm4456_vm8, %v5453_v8 }
 0x55c   :  { %3883 = vmatpush3.bf16.msra.mxu1 %v4859_v24 }
 0x55d   :  { %3896 = vmatprep.subr.bf16.mxu1 %v5453_v8 }
 0x600   :  { %v1233_v55 = vpop.f32.mrb[12].mxu0 }
 0x601   :  { %1363 = vxpose.xlu0.b32.start.end [1/1] (short) (narrow) %v1233_v55, 8  ;;  %v3866_v15 = vpop.f32.mrb[13].mxu0 }
 0x602   :  { %v1236_v56 = vpop.f32.mrb[14].mxu0 }
 0x603   :  { %v3867_v57 = vpop.f32.mrb[15].mxu0 }
 0x60a   :  { %v1187_v59 = vpop.f32.mrb[16].mxu1 }
 0x60b   :  { %1331 = vxpose.xlu1.b32.start.end [1/1] (short) (narrow) %v1187_v59, 8  ;;  %v3860_v49 = vpop.f32.mrb[17].mxu1 }
 0x60c   :  { %v1190_v61 = vpop.f32.mrb[18].mxu1 }
 0x60d   :  { %v3861_v63 = vpop.f32.mrb[19].mxu1 }
 0x629   :  { %v1279_v11 = vpop.f32.mrb[20].mxu1 }
 0x62a   :  { %1395 = vxpose.xlu1.b32.start.end [1/1] (short) (narrow) %v1279_v11, 8  ;;  %v3872_v13 = vpop.f32.mrb[21].mxu1 }
 0x62b   :  { %v1282_v18 = vpop.f32.mrb[22].mxu1 }
 0x62c   :  { %v3873_v19 = vpop.f32.mrb[23].mxu1 }
 0x62d   :  { %v1325_v17 = vpop.f32.mrb[16].mxu0 }
 0x62e   :  { %1427 = vxpose.xlu0.b32.start.end [1/1] (short) (narrow) %v1325_v17, 8  ;;  %v3878_v20 = vpop.f32.mrb[17].mxu0 }
 0x62f   :  { %v1328_v21 = vpop.f32.mrb[18].mxu0 }
 0x630   :  { %v3879_v23 = vpop.f32.mrb[19].mxu0 }
 0x631   :  { %v4886_v23 = vld [vmem:[#allocation2 + $0x1] sm:$0x1] }
 0x681   :  { %v1379_v16 = vpop.trf.xlu0 }
 0x68b   :  { %v1347_v25 = vpop.trf.xlu1 }
 0x68c   :  { %1459 = vxpose.xlu1.b32.start [1/4] (short) (narrow) %v1347_v25, 8  ;;  %v4888_v25 = vld [vmem:[#allocation2 + $0x3] sm:$0x1] }
 0x690   :  { %1460 = vxpose.xlu1.b32.cont [2/4] (short) (narrow) %v1379_v16, 8  ;;  %v4890_v16 = vld [vmem:[#allocation2 + $0x5] sm:$0x1] }
 0x6aa   :  { %v1411_v26 = vpop.trf.xlu1 }
 0x6ab   :  { %1461 = vxpose.xlu1.b32.cont [3/4] (short) (narrow) %v1411_v26, 8  ;;  %v4892_v26 = vld [vmem:[#allocation2 + $0x7] sm:$0x1] }
 0x6ae   :  { %v1443_v27 = vpop.trf.xlu0 }
 0x6af   :  { %1462 = vxpose.xlu1.b32.end [4/4] (short) (narrow) %v1443_v27, 8  ;;  %v4894_v27 = vld [vmem:[#allocation2 + $0x9] sm:$0x1] }
 0x723   :  { %v1475_v28 = vpop.trf.xlu1 }
 0x724   :  { %v1491_v29 = vpack.c.bf16 %v1475_v28, %v1475_v28  ;;  %v4896_v28 = vld [vmem:[#allocation2 + $0xb] sm:$0x1] }
 0x726   :  { %3885 = vmatmul.mubr.msk.bf16.vlgmr.msra.gmra.mrb[24].mxu1 %vm417_vm7, %v1491_v29  ;;  %v4898_v29 = vld [vmem:[#allocation2 + $0xd] sm:$0x1] }
 0x727   :  { %3904 = vmatprep.mubr.msk.bf16.mxu1 %vm4456_vm8, %v5453_v8  ;;  %5463 = vst [vmem:[#allocation32_spill] sm:$0xff] %v4898_v29 }
 0x7f9   :  { %v1547_v32 = vpop.f32.mrb[24].mxu1 }
 0x7fa   :  { %v1548_v33 = vadd.f32 %v4867_v30, %v1547_v32  ;;  %v3886_v34 = vpop.f32.mrb[25].mxu1  ;;  %v2083_v32 = vrot.slane %v4888_v25, 7 }
 0x7fb   :  { %v1550_v35 = vpop.f32.mrb[26].mxu1  ;;  %v4902_v34 = vld [vmem:[#allocation2 + $0xf] sm:$0x1] }
 0x7fc   :  { %v3887_v36 = vpop.f32.mrb[27].mxu1  ;;  %v1554_v37 = vrot.slane %v1548_v33, 1  ;;  %v1555_v46 = vrot.slane %v1548_v33, 2  ;;  %v1556_v47 = vrot.slane %v1548_v33, 3  ;;  %v1557_v48 = vrot.slane %v1548_v33, 4  ;;  %5464 = vst [vmem:[#allocation33_spill] sm:$0xff] %v4902_v34 }
 0x7fd   :  { %v1558_v52 = vrot.slane %v1548_v33, 5  ;;  %v1559_v53 = vrot.slane %v1548_v33, 6  ;;  %v1560_v54 = vrot.slane %v1548_v33, 7  ;;  %v1569_v59 = vadd.f32 %v1548_v33, %v4699_v0 }
 0x7fe   :  { %v1570_v55 = vadd.f32 %v1554_v37, %v4701_v1  ;;  %v1571_v15 = vadd.f32 %v1555_v46, %v4703_v2  ;;  %v1572_v56 = vadd.f32 %v1556_v47, %v4705_v3  ;;  %v1573_v57 = vadd.f32 %v1557_v48, %v4707_v4 }
 0x7ff   :  { %v1574_v49 = vadd.f32 %v1558_v52, %v4709_v5  ;;  %v1575_v11 = vadd.f32 %v1559_v53, %v4711_v6  ;;  %v1576_v13 = vadd.f32 %v1560_v54, %v4713_v7  ;;  %v2085_v33 = vrot.slane %v4890_v16, 6 }
 0x800   :  { %v1585_v61 = vrot.slane %v1570_v55, 7  ;;  %v1587_v63 = vrot.slane %v1571_v15, 6  ;;  %v1589_v19 = vrot.slane %v1572_v56, 5  ;;  %v1591_v2 = vrot.slane %v1573_v57, 4 }
 0x801   :  { %v1593_v17 = vrot.slane %v1574_v49, 3  ;;  %v1595_v0 = vrot.slane %v1575_v11, 2  ;;  %v1597_v20 = vrot.slane %v1576_v13, 1  ;;  %v2087_v35 = vrot.slane %v4892_v26, 5 }
 0x802   :  { %v1586_v18 = vsel %vm272_vm0, %v1585_v61, %v1569_v59  ;;  %v2089_v36 = vrot.slane %v4894_v27, 4  ;;  %v2084_v37 = vsel %vm272_vm0, %v2083_v32, %v4886_v23  ;;  %v2091_v46 = vrot.slane %v4896_v28, 3 }
 0x803   :  { %v1588_v1 = vsel %vm275_vm1, %v1587_v63, %v1586_v18  ;;  %v2086_v47 = vsel %vm275_vm1, %v2085_v33, %v2084_v37  ;;  %v2093_v48 = vrot.slane %v4898_v29, 2  ;;  %v2095_v53 = vrot.slane %v4902_v34, 1 }
 0x804   :  { %v1590_v3 = vsel %vm278_vm2, %v1589_v19, %v1588_v1  ;;  %v2088_v52 = vsel %vm278_vm2, %v2087_v35, %v2086_v47 }
 0x805   :  { %v1592_v4 = vsel %vm281_vm3, %v1591_v2, %v1590_v3  ;;  %v2090_v54 = vsel %vm281_vm3, %v2089_v36, %v2088_v52 }
 0x806   :  { %v1594_v5 = vsel %vm284_vm4, %v1593_v17, %v1592_v4  ;;  %v2092_v61 = vsel %vm284_vm4, %v2091_v46, %v2090_v54 }
 0x807   :  { %v1596_v21 = vsel %vm287_vm5, %v1595_v0, %v1594_v5  ;;  %v2094_v63 = vsel %vm287_vm5, %v2093_v48, %v2092_v61 }
 0x808   :  { %v1598_v6 = vsel %vm290_vm6, %v1597_v20, %v1596_v21  ;;  %v2096_v18 = vsel %vm290_vm6, %v2095_v53, %v2094_v63 }
 0x809   :  { %v1600_v7 = vsel %vm417_vm7, %v1598_v6, 0.0 }
 0x80a   :  { %1601 = vadd.xlane.f32.xlu0 %v1600_v7 }
 0x837   :  { %2098 = vxpose.xlu0.b32.start.end [1/1] (short) (narrow) %v2096_v18, 32 }
 0x897   :  { %v1602_v19 = vpop.xlane.xlu0 %1601 }
 0x898   :  { %v1604_v1 = vmul.f32 0.03125, %v1602_v19 }
 0x89a   :  { %v1606_v2 = vrot.slane %v1604_v1, 1  ;;  %v1607_v3 = vrot.slane %v1604_v1, 2  ;;  %v1608_v17 = vrot.slane %v1604_v1, 3  ;;  %v1609_v4 = vrot.slane %v1604_v1, 4 }
 0x89b   :  { %v1610_v0 = vrot.slane %v1604_v1, 5  ;;  %v1611_v5 = vrot.slane %v1604_v1, 6  ;;  %v1612_v20 = vrot.slane %v1604_v1, 7  ;;  %v1621_v21 = vsub.f32 %v1569_v59, %v1604_v1 }
 0x89c   :  { %v1622_v6 = vsub.f32 %v1570_v55, %v1606_v2  ;;  %v1623_v7 = vsub.f32 %v1571_v15, %v1607_v3  ;;  %v1624_v32 = vsub.f32 %v1572_v56, %v1608_v17  ;;  %v1625_v33 = vsub.f32 %v1573_v57, %v1609_v4 }
 0x89d   :  { %v1626_v35 = vsub.f32 %v1574_v49, %v1610_v0  ;;  %v1627_v36 = vsub.f32 %v1575_v11, %v1611_v5  ;;  %v1628_v37 = vsub.f32 %v1576_v13, %v1612_v20  ;;  %v1629_v53 = vmul.f32 %v1621_v21, %v1621_v21  ;;  %v4925_v0 = vld [vmem:[#allocation11] sm:$0xff]  }
 0x89e   :  { %v1630_v46 = vmul.f32 %v1622_v6, %v1622_v6  ;;  %v1631_v47 = vmul.f32 %v1623_v7, %v1623_v7  ;;  %v1632_v48 = vmul.f32 %v1624_v32, %v1624_v32  ;;  %v1633_v52 = vmul.f32 %v1625_v33, %v1625_v33  ;;  %3889 = vmatpush3.bf16.msra.mxu0 %v4925_v0 }
 0x89f   :  { %v1634_v54 = vmul.f32 %v1626_v35, %v1626_v35  ;;  %v1635_v18 = vmul.f32 %v1627_v36, %v1627_v36  ;;  %v1636_v19 = vmul.f32 %v1628_v37, %v1628_v37  ;;  %v5465_v5 = vmov 0.0  }
 0x8a0   :  { %v1645_v61 = vrot.slane %v1630_v46, 7  ;;  %v1647_v63 = vrot.slane %v1631_v47, 6  ;;  %v1649_v59 = vrot.slane %v1632_v48, 5  ;;  %v1651_v15 = vrot.slane %v1633_v52, 4  ;;  %3890 = vmatprep.subr.bf16.mxu0 %v5465_v5  ;;  %v4935_v47 = vld [vmem:[#allocation14] sm:$0xff]   ;;  %v4938_v48 = vld [vmem:[#allocation14 + $0x8] sm:$0xff]  }
 0x8a1   :  { %v1653_v57 = vrot.slane %v1634_v54, 3  ;;  %v1655_v11 = vrot.slane %v1635_v18, 2  ;;  %v1657_v1 = vrot.slane %v1636_v19, 1  ;;  %3897 = vmatpush3.bf16.msra.mxu1 %v4935_v47 }
 0x8a2   :  { %v1646_v8 = vsel %vm272_vm0, %v1645_v61, %v1629_v53  ;;  %3898 = vmatprep.subr.bf16.mxu1 %v5465_v5 }
 0x8a3   :  { %v1648_v55 = vsel %vm275_vm1, %v1647_v63, %v1646_v8  ;;  %v4928_v8 = vld [vmem:[#allocation11 + $0x8] sm:$0xff]   ;;  %v4943_v63 = vld [vmem:[#allocation17] ss:$0 sm:$0xff] }
 0x8a4   :  { %v1650_v56 = vsel %vm278_vm2, %v1649_v59, %v1648_v55  ;;  %3891 = vmatpush3.bf16.msra.mxu0 %v4928_v8  ;;  %5466 = vst [vmem:[#allocation34_spill] sm:$0xff] %v4943_v63 }
 0x8a5   :  { %v1652_v49 = vsel %vm281_vm3, %v1651_v15, %v1650_v56  ;;  %3899 = vmatpush3.bf16.msra.mxu1 %v4938_v48 }
 0x8a6   :  { %v1654_v13 = vsel %vm284_vm4, %v1653_v57, %v1652_v49  ;;  %3900 = vmatprep.subr.bf16.mxu1 %v5465_v5 }
 0x8a7   :  { %v1656_v2 = vsel %vm287_vm5, %v1655_v11, %v1654_v13  ;;  %v4945_v11 = vld [vmem:[#allocation19] ss:$0 sm:$0xff] }
 0x8a8   :  { %v1658_v3 = vsel %vm290_vm6, %v1657_v1, %v1656_v2  ;;  %5467 = vst [vmem:[#allocation35_spill] sm:$0xff] %v4945_v11 }
 0x8a9   :  { %v1660_v17 = vsel %vm417_vm7, %v1658_v3, 0.0 }
 0x8aa   :  { %1661 = vadd.xlane.f32.xlu1 %v1660_v17 }
 0x8b7   :  { %v2114_v4 = vpop.trf.xlu0 }
 0x8bb   :  { %v2115_v20 = vpop.trf.xlu0 }
 0x8bc   :  { %v4931_v46 = vpack.c.bf16 %v2115_v20, %v2114_v4 }
 0x8be   :  { %3908 = vmatprep.subr.bf16.mxu0 %v4931_v46 }
 0x937   :  { %v1662_v52 = vpop.xlane.xlu1 %1661 }
 0x938   :  { %v1663_v53 = vmul.f32 0.03125, %v1662_v52 }
 0x93a   :  { %v1664_v54 = vadd.f32 1e-05, %v1663_v53 }
 0x93c   :  { %4087 = vrsqrt.f32 %v1664_v54 }
 0x946   :  { %v4088_v61 = vpop.eup %4087 }
 0x947   :  { %v1667_v18 = vrot.slane %v4088_v61, 1  ;;  %v1668_v19 = vrot.slane %v4088_v61, 2  ;;  %v1669_v59 = vrot.slane %v4088_v61, 3  ;;  %v1670_v55 = vrot.slane %v4088_v61, 4 }
 0x948   :  { %v1671_v15 = vrot.slane %v4088_v61, 5  ;;  %v1672_v56 = vrot.slane %v4088_v61, 6  ;;  %v1673_v57 = vrot.slane %v4088_v61, 7  ;;  %v1682_v49 = vmul.f32 %v4088_v61, %v1621_v21 }
 0x949   :  { %v1683_v13 = vmul.f32 %v1667_v18, %v1622_v6  ;;  %v1684_v1 = vmul.f32 %v1668_v19, %v1623_v7  ;;  %v1685_v2 = vmul.f32 %v1669_v59, %v1624_v32  ;;  %v1686_v3 = vmul.f32 %v1670_v55, %v1625_v33 }
 0x94a   :  { %v1687_v17 = vmul.f32 %v1671_v15, %v1626_v35  ;;  %v1688_v4 = vmul.f32 %v1672_v56, %v1627_v36  ;;  %v1689_v20 = vmul.f32 %v1673_v57, %v1628_v37  ;;  %v1696_v52 = vmul.f32 %v4943_v63, %v1682_v49 }
 0x94b   :  { %v1697_v53 = vmul.f32 %v4943_v63, %v1683_v13  ;;  %v1698_v54 = vmul.f32 %v4943_v63, %v1684_v1  ;;  %v1699_v34 = vmul.f32 %v4943_v63, %v1685_v2  ;;  %v1700_v29 = vmul.f32 %v4943_v63, %v1686_v3 }
 0x94c   :  { %v1701_v21 = vmul.f32 %v4943_v63, %v1687_v17  ;;  %v1702_v6 = vmul.f32 %v4943_v63, %v1688_v4  ;;  %v1703_v7 = vmul.f32 %v4943_v63, %v1689_v20  ;;  %v4956_v32 = vadd.f32 %v4945_v11, %v1696_v52  ;;  %v2116_v17 = vpop.trf.xlu0 }
 0x94d   :  { %v4959_v33 = vadd.f32 %v4945_v11, %v1697_v53  ;;  %v4962_v35 = vadd.f32 %v4945_v11, %v1698_v54  ;;  %v4965_v36 = vadd.f32 %v4945_v11, %v1699_v34  ;;  %v4968_v37 = vadd.f32 %v4945_v11, %v1700_v29 }
 0x94e   :  { %v4971_v61 = vadd.f32 %v4945_v11, %v1701_v21  ;;  %v4974_v18 = vadd.f32 %v4945_v11, %v1702_v6  ;;  %v4977_v19 = vadd.f32 %v4945_v11, %v1703_v7  ;;  %v1718_v59 = vpack.c.bf16 %v4956_v32, %v4956_v32 }
 0x94f   :  { %v1719_v55 = vpack.c.bf16 %v4959_v33, %v4959_v33  ;;  %v1720_v34 = vpack.c.bf16 %v4962_v35, %v4962_v35  ;;  %v1721_v29 = vpack.c.bf16 %v4965_v36, %v4965_v36  ;;  %v1722_v15 = vpack.c.bf16 %v4968_v37, %v4968_v37 }
 0x950   :  { %5468 = vst [vmem:[#allocation36_spill] sm:$0xff] %v4974_v18  ;;  %5469 = vst [vmem:[#allocation37_spill] sm:$0xff] %v4977_v19  ;;  %v1723_v56 = vpack.c.bf16 %v4971_v61, %v4971_v61  ;;  %v1724_v57 = vpack.c.bf16 %v4974_v18, %v4974_v18  ;;  %v1725_v49 = vpack.c.bf16 %v4977_v19, %v4977_v19  ;;  %v1740_v4 = vunpack.c.l.b16 %v1718_v59 }
 0x951   :  { %v1741_v13 = vunpack.c.l.b16 %v1719_v55  ;;  %v1742_v1 = vunpack.c.l.b16 %v1720_v34  ;;  %v1743_v2 = vunpack.c.l.b16 %v1721_v29  ;;  %v1744_v3 = vunpack.c.l.b16 %v1722_v15  ;;  %v2117_v29 = vpop.trf.xlu0 }
 0x952   :  { %v1745_v20 = vunpack.c.l.b16 %v1723_v56  ;;  %v1746_v54 = vunpack.c.l.b16 %v1724_v57  ;;  %v1747_v21 = vunpack.c.l.b16 %v1725_v49  ;;  %v2131_v49 = vpack.c.bf16 %v2117_v29, %v2116_v17 }
 0x953   :  { %v1748_v52 = vrot.slane %v1741_v13, 7  ;;  %v1750_v53 = vrot.slane %v1742_v1, 6  ;;  %v1752_v7 = vrot.slane %v1743_v2, 5  ;;  %v1754_v63 = vrot.slane %v1744_v3, 4 }
 0x954   :  { %v1756_v19 = vrot.slane %v1745_v20, 3  ;;  %v1758_v34 = vrot.slane %v1746_v54, 2  ;;  %v1760_v15 = vrot.slane %v1747_v21, 1 }
 0x955   :  { %v1749_v6 = vsel %vm272_vm0, %v1748_v52, %v1740_v4 }
 0x956   :  { %v1751_v11 = vsel %vm275_vm1, %v1750_v53, %v1749_v6 }
 0x957   :  { %v1753_v18 = vsel %vm278_vm2, %v1752_v7, %v1751_v11 }
 0x958   :  { %v1755_v55 = vsel %vm281_vm3, %v1754_v63, %v1753_v18 }
 0x959   :  { %v1757_v59 = vsel %vm284_vm4, %v1756_v19, %v1755_v55 }
 0x95a   :  { %v1759_v56 = vsel %vm287_vm5, %v1758_v34, %v1757_v59 }
 0x95b   :  { %v1761_v57 = vsel %vm290_vm6, %v1760_v15, %v1759_v56 }
 0x95c   :  { %v1762_v13 = vpack.c.b16 %v1761_v57, %v1761_v57 }
 0x95e   :  { %3893 = vmatmul.mubr.msk.bf16.vlgmr.msra.gmra.mrb[20].mxu0 %vm417_vm7, %v1762_v13 }
 0x95f   :  { %3909 = vmatpush3.bf16.msra.mxu0 %v4931_v46  ;;  %3912 = vmatprep.mubr.msk.bf16.mxu0 %vm417_vm7, %v4730_v22  ;;  %v5019_v22 = vld [vmem:[#allocation14 + $0x10] sm:$0xff]  }
 0x960   :  { %3910 = vmatprep.subr.bf16.mxu0 %v2131_v49  ;;  %3901 = vmatpush3.bf16.msra.mxu1 %v5019_v22 }
 0x961   :  { %3902 = vmatprep.subr.bf16.mxu1 %v5465_v5 }
 0x963   :  { %3911 = vmatpush3.bf16.msra.mxu0 %v2131_v49 }
 0x964   :  { %3936 = vmatprep.subr.bf16.mxu0 %v5465_v5 }
 0x966   :  { %3913 = vmatmul.mubr.msk.bf16.vlgmr.msra.gmra.mrb[24].mxu0 %vm417_vm7, %v4734_v38  ;;  %v5023_v38 = vld [vmem:[#allocation14 + $0x18] sm:$0xff]  }
 0x967   :  { %3916 = vmatprep.mubr.msk.bf16.mxu0 %vm417_vm7, %v4736_v39  ;;  %3903 = vmatpush3.bf16.msra.mxu1 %v5023_v38  ;;  %v5027_v39 = vld [vmem:[#allocation13] ss:$0 sm:$0xff] }
 0x968   :  { %3924 = vmatprep.subr.bf16.mxu1 %v5465_v5 }
 0x96e   :  { %3917 = vmatmul.mubr.msk.bf16.gmra.mrb[28].mxu0 %vm417_vm7, %v4742_v40 }
 0x96f   :  { %3920 = vmatprep.mubr.msk.bf16.mxu0 %vm417_vm7, %v4746_v41 }
 0x976   :  { %3921 = vmatmul.mubr.msk.bf16.gmra.mrb[32].mxu0 %vm417_vm7, %v4748_v42 }
 0x977   :  { %3938 = vmatprep.mubr.msk.bf16.mxu0 %vm4456_vm8, %v5465_v5 }
 0xa31   :  { %v1812_v40 = vpop.f32.mrb[20].mxu0 }
 0xa32   :  { %v1813_v41 = vadd.f32 %v5027_v39, %v1812_v40  ;;  %v3894_v42 = vpop.f32.mrb[21].mxu0 }
 0xa33   :  { %v1815_v46 = vpop.f32.mrb[22].mxu0 }
 0xa34   :  { %v1818_v63 = vmax.f32 %v1813_v41, 0.0  ;;  %v3895_v11 = vpop.f32.mrb[23].mxu0 }
 0xa36   :  { %v1819_v18 = vpack.c.bf16 %v1818_v63, %v1818_v63 }
 0xa38   :  { %3905 = vmatmul.mubr.msk.bf16.vlgmr.msra.gmra.mrb[28].mxu1 %vm1850_vm11, %v1819_v18 }
 0xa39   :  { %v3914_v19 = vpop.f32.mrb[24].mxu0  ;;  %3926 = vmatprep.mubr.msk.bf16.mxu1 %vm4456_vm8, %v5465_v5 }
 0xa3a   :  { %v2166_v1 = vpop.f32.mrb[25].mxu0 }
 0xa3b   :  { %v3915_v2 = vpop.f32.mrb[26].mxu0  ;;  %v2167_v7 = vadd.f32 %v2166_v1, %v4754_v43  ;;  %v2175_v43 = vadd.f32 %v3914_v19, %v4773_v9 }
 0xa3c   :  { %v2169_v3 = vpop.f32.mrb[27].mxu0 }
 0xa3d   :  { %v2170_v4 = vadd.f32 %v2169_v3, %v4758_v45 }
 0xa41   :  { %v3918_v17 = vpop.f32.mrb[28].mxu0 }
 0xa42   :  { %v2191_v20 = vadd.f32 %v3918_v17, %v4760_v50  ;;  %v2182_v52 = vpop.f32.mrb[29].mxu0  ;;  %v2178_v50 = vadd.f32 %v3915_v2, %v4781_v12 }
 0xa43   :  { %v2183_v53 = vadd.f32 %v2182_v52, %v4762_v51  ;;  %v3919_v54 = vpop.f32.mrb[30].mxu0 }
 0xa44   :  { %v4050_v21 = vpack.i.bf16 %v2170_v4, %v2191_v20  ;;  %v2185_v6 = vpop.f32.mrb[31].mxu0  ;;  %v2194_v34 = vadd.f32 %v3919_v54, %v4767_v58 }
 0xa45   :  { %v2186_v55 = vadd.f32 %v2185_v6, %v4756_v44  ;;  %2345 = vxpose.xlu1.b32.start.end [1/1] (short) (narrow) %v2183_v53, 8 }
 0xa47   :  { %v4043_v29 = vpack.i.bf16 %v2186_v55, %v2167_v7 }
 0xa49   :  { %v5039_v59 = vpop.f32.mrb[32].mxu0  ;;  %2441 = vxpose.xlu1.b32.start.end [1/1] (short) (narrow) %v2194_v34, 8  ;;  %4044 = vxpose.xlu0.b32.start.end [1/1] (short) (narrow) %v4043_v29, 8 }
 0xa4a   :  { %v5041_v45 = vpop.f32.mrb[33].mxu0 }
 0xa4b   :  { %v5044_v51 = vpop.f32.mrb[34].mxu0 }
 0xa4c   :  { %v5046_v15 = vpop.f32.mrb[35].mxu0 }
 0xa4d   :  { %2309 = vxpose.xlu1.b32.start.end [1/1] (short) (narrow) %v2178_v50, 8  ;;  %4051 = vxpose.xlu0.b32.start.end [1/1] (short) (narrow) %v4050_v21, 8 }
 0xa51   :  { %2277 = vxpose.xlu0.b32.start.end [1/1] (short) (narrow) %v2175_v43, 8 }
 0xac5   :  { %v2361_v44 = vpop.trf.xlu1 }
 0xac6   :  { %v2473_v58 = vpack.c.bf16 %v2361_v44, %v2361_v44 }
 0xac8   :  { %v2613_v56 = vsel %vm913_vm9, %v2473_v58, 0 }
 0xac9   :  { %3925 = vmatpush3.bf16.xpose.msra.mxu1 %v2613_v56  ;;  %v4045_v57 = vpop.trf.xlu0  ;;  %v2457_v63 = vpop.trf.xlu1 }
 0xaca   :  { %v4049_v49 = vunpack.i.h.bf16 %v4045_v57  ;;  %v4046_v13 = vunpack.i.l.bf16 %v4045_v57  ;;  %3930 = vmatprep.subr.bf16.mxu1 %v5465_v5  ;;  %v2476_v19 = vpack.c.bf16 %v2457_v63, %v2457_v63 }
 0xacc   :  { %v2341_v12 = vpack.c.bf16 %v4046_v13, %v4046_v13  ;;  %v2474_v40 = vpack.c.bf16 %v4049_v49, %v4049_v49  ;;  %v2751_v3 = vsel %vm913_vm9, %v2476_v19, 0 }
 0xacd   :  { %v4052_v41 = vpop.trf.xlu0  ;;  %v2325_v4 = vpop.trf.xlu1 }
 0xace   :  { %v4053_v42 = vunpack.i.l.bf16 %v4052_v41  ;;  %v2659_v46 = vsel %vm913_vm9, %v2474_v40, 0  ;;  %v4056_v11 = vunpack.i.h.bf16 %v4052_v41  ;;  %v2344_v20 = vpack.c.bf16 %v2325_v4, %v2325_v4 }
 0xad0   :  { %3927 = vmatmul.mubr.msk.bf16.vlgmr.msra.gmra.mrb[32].mxu1 %vm913_vm9, %v2341_v12  ;;  %v2475_v9 = vpack.c.bf16 %v4053_v42, %v4053_v42  ;;  %v2342_v2 = vpack.c.bf16 %v4056_v11, %v4056_v11 }
 0xad1   :  { %3931 = vmatpush3.bf16.xpose.msra.mxu1 %v2659_v46  ;;  %3932 = vmatprep.mubr.msk.bf16.mxu1 %vm4456_vm8, %v5465_v5  ;;  %v2293_v1 = vpop.trf.xlu0 }
 0xad2   :  { %v2705_v18 = vsel %vm913_vm9, %v2475_v9, 0  ;;  %3942 = vmatprep.subr.bf16.mxu1 %v5465_v5  ;;  %v2343_v17 = vpack.c.bf16 %v2293_v1, %v2293_v1 }
 0xad3   :  { %3937 = vmatpush3.bf16.xpose.msra.mxu0 %v2705_v18 }
 0xad4   :  { %3948 = vmatprep.subr.bf16.mxu0 %v5465_v5 }
 0xad8   :  { %3933 = vmatmul.mubr.msk.bf16.vlgmr.msra.gmra.mrb[36].mxu1 %vm913_vm9, %v2342_v2 }
 0xad9   :  { %3943 = vmatpush3.bf16.xpose.msra.mxu1 %v2751_v3  ;;  %3944 = vmatprep.mubr.msk.bf16.mxu1 %vm4456_vm8, %v5465_v5 }
 0xada   :  { %3939 = vmatmul.mubr.msk.bf16.vlgmr.msra.gmra.mrb[36].mxu0 %vm913_vm9, %v2343_v17  ;;  %3954 = vmatprep.subr.bf16.mxu1 %v5465_v5 }
 0xadb   :  { %3950 = vmatprep.mubr.msk.bf16.mxu0 %vm4456_vm8, %v5465_v5 }
 0xae0   :  { %3945 = vmatmul.mubr.msk.bf16.vlgmr.msra.gmra.mrb[40].mxu1 %vm913_vm9, %v2344_v20 }
 0xae1   :  { %3956 = vmatprep.mubr.msk.bf16.mxu1 %vm4456_vm8, %v5465_v5 }
 0xb0b   :  { %v5069_v52 = vpop.f32.mrb[28].mxu1 }
 0xb0c   :  { %v3906_v53 = vpop.f32.mrb[29].mxu1 }
 0xb0d   :  { %v1891_v54 = vpop.f32.mrb[30].mxu1 }
 0xb0e   :  { %v3907_v21 = vpop.f32.mrb[31].mxu1 }
 0xba3   :  { %v2649_v6 = vpop.f32.mrb[32].mxu1 }
 0xba4   :  { %v3928_v7 = vpop.f32.mrb[33].mxu1  ;;  %v2793_v55 = vsel %vm913_vm9, %v2649_v6, -inf }
 0xba5   :  { %2794 = vmax.xlane.f32.xlu0 %v2793_v55  ;;  %v2652_v34 = vpop.f32.mrb[34].mxu1 }
 0xba6   :  { %v3929_v29 = vpop.f32.mrb[35].mxu1 }
 0xbab   :  { %v2695_v50 = vpop.f32.mrb[36].mxu1 }
 0xbac   :  { %v3934_v43 = vpop.f32.mrb[37].mxu1  ;;  %v2796_v44 = vsel %vm913_vm9, %v2695_v50, -inf }
 0xbad   :  { %2797 = vmax.xlane.f32.xlu1 %v2796_v44  ;;  %v2698_v58 = vpop.f32.mrb[38].mxu1  ;;  %v2741_v56 = vpop.f32.mrb[36].mxu0 }
 0xbae   :  { %v3935_v57 = vpop.f32.mrb[39].mxu1  ;;  %v2799_v49 = vsel %vm913_vm9, %v2741_v56, -inf  ;;  %v3940_v13 = vpop.f32.mrb[37].mxu0  ;;  %v2199_v58 = vadd.f32 %v5041_v45, %v4816_v31 }
 0xbaf   :  { %v2744_v12 = vpop.f32.mrb[38].mxu0  ;;  %v2210_v57 = vadd.f32 %v5044_v51, %v4832_v10 }
 0xbb0   :  { %v3941_v40 = vpop.f32.mrb[39].mxu0 }
 0xbb1   :  { %2800 = vmax.xlane.f32.xlu1 %v2799_v49  ;;  %v2202_v49 = vadd.f32 %v5046_v15, %v4823_v60 }
 0xbb3   :  { %v2787_v41 = vpop.f32.mrb[40].mxu1 }
 0xbb4   :  { %v2802_v42 = vsel %vm913_vm9, %v2787_v41, -inf  ;;  %v3946_v46 = vpop.f32.mrb[41].mxu1 }
 0xbb5   :  { %2803 = vmax.xlane.f32.xlu1 %v2802_v42  ;;  %v2790_v63 = vpop.f32.mrb[42].mxu1 }
 0xbb6   :  { %v3947_v9 = vpop.f32.mrb[43].mxu1 }
 0xc32   :  { %v2795_v11 = vpop.xlane.xlu0 %2794 }
 0xc33   :  { %v2805_v18 = vsub.f32 %v2649_v6, %v2795_v11 }
 0xc35   :  { %v2809_v19 = vmul.f32 1.442695, %v2805_v18 }
 0xc37   :  { %4089 = vpow2.f32 %v2809_v19 }
 0xc3a   :  { %v2798_v1 = vpop.xlane.xlu1 %2797 }
 0xc3b   :  { %v2806_v2 = vsub.f32 %v2695_v50, %v2798_v1 }
 0xc3d   :  { %v2811_v3 = vmul.f32 1.442695, %v2806_v2 }
 0xc3e   :  { %v2801_v17 = vpop.xlane.xlu1 %2800 }
 0xc3f   :  { %4091 = vpow2.f32 %v2811_v3  ;;  %v2807_v4 = vsub.f32 %v2741_v56, %v2801_v17  ;;  %v2207_v56 = vadd.f32 %v5039_v59, %v4828_v62 }
 0xc41   :  { %v4090_v20 = vpop.eup %4089  ;;  %v2813_v53 = vmul.f32 1.442695, %v2807_v4 }
 0xc42   :  { %v2804_v54 = vpop.xlane.xlu1 %2803  ;;  %v2817_v21 = vsel %vm913_vm9, %v4090_v20, 0.0 }
 0xc43   :  { %4093 = vpow2.f32 %v2813_v53  ;;  %v2808_v7 = vsub.f32 %v2787_v41, %v2804_v54  ;;  %2818 = vadd.xlane.f32.xlu0 %v2817_v21 }
 0xc45   :  { %v2815_v55 = vmul.f32 1.442695, %v2808_v7 }
 0xc47   :  { %4095 = vpow2.f32 %v2815_v55 }
 0xc49   :  { %v4092_v34 = vpop.eup %4091 }
 0xc4a   :  { %v2820_v6 = vsel %vm913_vm9, %v4092_v34, 0.0 }
 0xc4b   :  { %2821 = vadd.xlane.f32.xlu1 %v2820_v6 }
 0xc4d   :  { %v4094_v29 = vpop.eup %4093 }
 0xc4e   :  { %v2823_v50 = vsel %vm913_vm9, %v4094_v29, 0.0 }
 0xc4f   :  { %2824 = vadd.xlane.f32.xlu0 %v2823_v50 }
 0xc51   :  { %v4096_v43 = vpop.eup %4095 }
 0xc52   :  { %v2826_v44 = vsel %vm913_vm9, %v4096_v43, 0.0 }
 0xc53   :  { %2827 = vadd.xlane.f32.xlu1 %v2826_v44 }
 0xc7c   :  { %2477 = vxpose.xlu0.b32.start.end [1/1] (short) (narrow) %v2199_v58, 8 }
 0xc80   :  { %2541 = vxpose.xlu0.b32.start.end [1/1] (short) (narrow) %v2207_v56, 8 }
 0xc84   :  { %2573 = vxpose.xlu0.b32.start.end [1/1] (short) (narrow) %v2210_v57, 8 }
 0xc86   :  { %2509 = vxpose.xlu1.b32.start.end [1/1] (short) (narrow) %v2202_v49, 8 }
 0xcd0   :  { %v2819_v13 = vpop.xlane.xlu0 %2818 }
 0xcd1   :  { %4097 = vrcp.f32 %v2819_v13 }
 0xcd8   :  { %v2822_v40 = vpop.xlane.xlu1 %2821 }
 0xcdb   :  { %v4098_v41 = vpop.eup %4097 }
 0xcdc   :  { %v2825_v12 = vpop.xlane.xlu0 %2824  ;;  %v2833_v45 = vmul.f32 %v4098_v41, %v4090_v20 }
 0xcdd   :  { %4099 = vrcp.f32 %v2825_v12 }
 0xcde   :  { %4101 = vrcp.f32 %v2822_v40  ;;  %v2837_v51 = vpack.c.bf16 %v2833_v45, %v2833_v45 }
 0xce0   :  { %v2828_v62 = vpop.xlane.xlu1 %2827 }
 0xce1   :  { %4103 = vrcp.f32 %v2828_v62 }
 0xce7   :  { %v4100_v60 = vpop.eup %4099 }
 0xce8   :  { %v4102_v63 = vpop.eup %4101  ;;  %v2835_v11 = vmul.f32 %v4100_v60, %v4094_v29 }
 0xce9   :  { %v2834_v19 = vmul.f32 %v4102_v63, %v4092_v34 }
 0xcea   :  { %v2839_v17 = vpack.c.bf16 %v2835_v11, %v2835_v11 }
 0xceb   :  { %v2838_v4 = vpack.c.bf16 %v2834_v19, %v2834_v19  ;;  %v4104_v53 = vpop.eup %4103 }
 0xcec   :  { %v2836_v54 = vmul.f32 %v4104_v53, %v4096_v43 }
 0xcee   :  { %v2840_v21 = vpack.c.bf16 %v2836_v54, %v2836_v54 }
 0xcfc   :  { %v2493_v31 = vpop.trf.xlu0 }
 0xcfd   :  { %v2605_v42 = vpack.c.bf16 %v2493_v31, %v2493_v31 }
 0xcff   :  { %v2845_v59 = vsel %vm1149_vm10, %v2605_v42, 0  ;;  %v5124_v42 = vld [vmem:[#allocation16] ss:$0 sm:$0xff] }
 0xd00   :  { %3949 = vmatpush3.bf16.msra.mxu0 %v2845_v59  ;;  %v2557_v10 = vpop.trf.xlu0 }
 0xd01   :  { %v2607_v46 = vpack.c.bf16 %v2557_v10, %v2557_v10  ;;  %3960 = vmatprep.subr.bf16.mxu0 %v5465_v5 }
 0xd03   :  { %3951 = vmatmul.mubr.msk.bf16.vlgmr.msra.gmra.mrb[40].mxu0 %vm913_vm9, %v2837_v51  ;;  %v2937_v15 = vsel %vm1149_vm10, %v2607_v46, 0 }
 0xd04   :  { %3961 = vmatpush3.bf16.msra.mxu0 %v2937_v15  ;;  %3962 = vmatprep.mubr.msk.bf16.mxu0 %vm4456_vm8, %v5465_v5  ;;  %v2589_v9 = vpop.trf.xlu0 }
 0xd05   :  { %3972 = vmatprep.subr.bf16.mxu0 %v5465_v5  ;;  %v2608_v2 = vpack.c.bf16 %v2589_v9, %v2589_v9 }
 0xd06   :  { %v2525_v18 = vpop.trf.xlu1 }
 0xd07   :  { %v2606_v1 = vpack.c.bf16 %v2525_v18, %v2525_v18  ;;  %v2983_v20 = vsel %vm1149_vm10, %v2608_v2, 0 }
 0xd09   :  { %v2891_v3 = vsel %vm1149_vm10, %v2606_v1, 0 }
 0xd0a   :  { %3955 = vmatpush3.bf16.msra.mxu1 %v2891_v3 }
 0xd0b   :  { %3963 = vmatmul.mubr.msk.bf16.vlgmr.msra.gmra.mrb[44].mxu0 %vm913_vm9, %v2839_v17  ;;  %3966 = vmatprep.subr.bf16.mxu1 %v5465_v5 }
 0xd0c   :  { %3973 = vmatpush3.bf16.msra.mxu0 %v4856_v14  ;;  %3976 = vmatprep.mubr.msk.bf16.mxu0 %vm4456_vm8, %v5465_v5 }
 0xd0d   :  { %3957 = vmatmul.mubr.msk.bf16.vlgmr.msra.gmra.mrb[44].mxu1 %vm913_vm9, %v2838_v4  ;;  %3974 = vmatprep.subr.bf16.mxu0 %v5465_v5 }
 0xd0e   :  { %3967 = vmatpush3.bf16.msra.mxu1 %v2983_v20  ;;  %3968 = vmatprep.mubr.msk.bf16.mxu1 %vm4456_vm8, %v5465_v5 }
 0xd0f   :  { %3980 = vmatprep.subr.bf16.mxu1 %v5465_v5 }
 0xd10   :  { %3975 = vmatpush3.bf16.msra.mxu0 %v4859_v24 }
 0xd11   :  { %3988 = vmatprep.subr.bf16.mxu0 %v5465_v5 }
 0xd15   :  { %3969 = vmatmul.mubr.msk.bf16.vlgmr.msra.gmra.mrb[48].mxu1 %vm913_vm9, %v2840_v21 }
 0xd16   :  { %3981 = vmatpush3.bf16.msra.mxu1 %v4925_v0  ;;  %3984 = vmatprep.mubr.msk.bf16.mxu1 %vm4456_vm8, %v5465_v5 }
 0xd17   :  { %3982 = vmatprep.subr.bf16.mxu1 %v5465_v5 }
 0xd1a   :  { %3983 = vmatpush3.bf16.msra.mxu1 %v4928_v8 }
 0xdd6   :  { %v2881_v14 = vpop.f32.mrb[40].mxu0 }
 0xdd7   :  { %3025 = vxpose.xlu0.b32.start.end [1/1] (short) (narrow) %v2881_v14, 8  ;;  %v3952_v7 = vpop.f32.mrb[41].mxu0 }
 0xdd8   :  { %v2884_v55 = vpop.f32.mrb[42].mxu0 }
 0xdd9   :  { %v3953_v34 = vpop.f32.mrb[43].mxu0 }
 0xdde   :  { %v2973_v24 = vpop.f32.mrb[44].mxu0 }
 0xddf   :  { %3089 = vxpose.xlu0.b32.start.end [1/1] (short) (narrow) %v2973_v24, 8  ;;  %v3964_v6 = vpop.f32.mrb[45].mxu0 }
 0xde0   :  { %v2927_v29 = vpop.f32.mrb[44].mxu1  ;;  %v2976_v50 = vpop.f32.mrb[46].mxu0 }
 0xde1   :  { %v3965_v43 = vpop.f32.mrb[47].mxu0  ;;  %3057 = vxpose.xlu1.b32.start.end [1/1] (short) (narrow) %v2927_v29, 8  ;;  %v3958_v0 = vpop.f32.mrb[45].mxu1  ;;  %v5470_v50 = vld [vmem:[#allocation32_spill] sm:$0xff] }
 0xde2   :  { %v2930_v44 = vpop.f32.mrb[46].mxu1  ;;  %v5471_v0 = vld [vmem:[#allocation36_spill] sm:$0xff] }
 0xde3   :  { %v3959_v58 = vpop.f32.mrb[47].mxu1 }
 0xde8   :  { %v3019_v56 = vpop.f32.mrb[48].mxu1 }
 0xde9   :  { %3121 = vxpose.xlu1.b32.start.end [1/1] (short) (narrow) %v3019_v56, 8  ;;  %v3970_v57 = vpop.f32.mrb[49].mxu1 }
 0xdea   :  { %v3022_v49 = vpop.f32.mrb[50].mxu1 }
 0xdeb   :  { %v3971_v8 = vpop.f32.mrb[51].mxu1 }
 0xdec   :  { %v5473_v8 = vld [vmem:[#allocation37_spill] sm:$0xff] }
 0xe57   :  { %v3041_v13 = vpop.trf.xlu0 }
 0xe58   :  { %3153 = vxpose.xlu0.b32.start [1/4] (short) (narrow) %v3041_v13, 8 }
 0xe5f   :  { %v3105_v40 = vpop.trf.xlu0 }
 0xe61   :  { %v3073_v12 = vpop.trf.xlu1 }
 0xe62   :  { %3154 = vxpose.xlu0.b32.cont [2/4] (short) (narrow) %v3073_v12, 8 }
 0xe66   :  { %3155 = vxpose.xlu0.b32.cont [3/4] (short) (narrow) %v3105_v40, 8 }
 0xe69   :  { %v3137_v41 = vpop.trf.xlu1 }
 0xe6a   :  { %3156 = vxpose.xlu0.b32.end [4/4] (short) (narrow) %v3137_v41, 8 }
 0xede   :  { %v3169_v31 = vpop.trf.xlu0 }
 0xedf   :  { %v3185_v45 = vpack.c.bf16 %v3169_v31, %v3169_v31 }
 0xee1   :  { %3977 = vmatmul.mubr.msk.bf16.vlgmr.msra.gmra.mrb[48].mxu0 %vm417_vm7, %v3185_v45 }
 0xee2   :  { %3989 = vmatpush3.bf16.msra.mxu0 %v4935_v47  ;;  %3996 = vmatprep.mubr.msk.bf16.mxu0 %vm4456_vm8, %v5465_v5  ;;  %v1889_v47 = vadd.f32 %v5124_v42, %v5069_v52 }
 0xee3   :  { %3990 = vmatprep.subr.bf16.mxu0 %v5465_v5 }
 0xee4   :  { %v1895_v62 = vrot.slane %v1889_v47, 1  ;;  %v1896_v59 = vrot.slane %v1889_v47, 2  ;;  %v1897_v51 = vrot.slane %v1889_v47, 3  ;;  %v1898_v46 = vrot.slane %v1889_v47, 4 }
 0xee5   :  { %v1899_v15 = vrot.slane %v1889_v47, 5  ;;  %v1900_v18 = vrot.slane %v1889_v47, 6  ;;  %v1901_v55 = vrot.slane %v1889_v47, 7 }
 0xee6   :  { %3991 = vmatpush3.bf16.msra.mxu0 %v4938_v48  ;;  %v5129_v10 = vadd.f32 %v1895_v62, %v4959_v33  ;;  %v5132_v48 = vadd.f32 %v1896_v59, %v4962_v35  ;;  %v5140_v60 = vadd.f32 %v1897_v51, %v4965_v36 }
 0xee7   :  { %3992 = vmatprep.subr.bf16.mxu0 %v5465_v5  ;;  %v5151_v53 = vadd.f32 %v1899_v15, %v4971_v61  ;;  %v5163_v44 = vadd.f32 %v1900_v18, %v5471_v0  ;;  %v5172_v13 = vadd.f32 %v1901_v55, %v5473_v8 }
 0xee8   :  { %v1930_v19 = vrot.slane %v5140_v60, 5 }
 0xee9   :  { %v1934_v56 = vrot.slane %v5151_v53, 3  ;;  %v1936_v31 = vrot.slane %v5163_v44, 2 }
 0xeea   :  { %3993 = vmatpush3.bf16.msra.mxu0 %v5019_v22  ;;  %v1926_v22 = vrot.slane %v5129_v10, 7 }
 0xeeb   :  { %3994 = vmatprep.subr.bf16.mxu0 %v5465_v5  ;;  %v5136_v5 = vadd.f32 %v1889_v47, %v4956_v32  ;;  %v5147_v32 = vadd.f32 %v1898_v46, %v4968_v37 }
 0xeed   :  { %v1927_v52 = vsel %vm272_vm0, %v1926_v22, %v5136_v5  ;;  %v1932_v34 = vrot.slane %v5147_v32, 4  ;;  %v1938_v22 = vrot.slane %v5172_v13, 1 }
 0xeee   :  { %3995 = vmatpush3.bf16.msra.mxu0 %v5023_v38  ;;  %v1928_v38 = vrot.slane %v5132_v48, 6 }
 0xef0   :  { %v1929_v9 = vsel %vm275_vm1, %v1928_v38, %v1927_v52 }
 0xfb4   :  { %v3223_v33 = vpop.f32.mrb[48].mxu0 }
 0xfb5   :  { %v3224_v35 = vadd.f32 %v4867_v30, %v3223_v33  ;;  %v3978_v63 = vpop.f32.mrb[49].mxu0  ;;  %v1931_v30 = vsel %vm278_vm2, %v1930_v19, %v1929_v9 }
 0xfb6   :  { %v3226_v11 = vpop.f32.mrb[50].mxu0 }
 0xfb7   :  { %v3979_v1 = vpop.f32.mrb[51].mxu0  ;;  %v3230_v36 = vrot.slane %v3224_v35, 1  ;;  %v3231_v2 = vrot.slane %v3224_v35, 2  ;;  %v3232_v3 = vrot.slane %v3224_v35, 3  ;;  %v3233_v17 = vrot.slane %v3224_v35, 4 }
 0xfb8   :  { %v3234_v4 = vrot.slane %v3224_v35, 5  ;;  %v3235_v20 = vrot.slane %v3224_v35, 6  ;;  %v3236_v54 = vrot.slane %v3224_v35, 7  ;;  %v3245_v24 = vadd.f32 %v3224_v35, %v4886_v23 }
 0xfb9   :  { %v3246_v21 = vadd.f32 %v3230_v36, %v4888_v25  ;;  %v3247_v37 = vadd.f32 %v3231_v2, %v4890_v16  ;;  %v3248_v14 = vadd.f32 %v3232_v3, %v4892_v26  ;;  %v3249_v7 = vadd.f32 %v3233_v17, %v4894_v27  ;;  %v5472_v16 = vld [vmem:[#allocation33_spill] sm:$0xff] }
 0xfba   :  { %v3250_v6 = vadd.f32 %v3234_v4, %v4896_v28  ;;  %v3251_v43 = vadd.f32 %v3235_v20, %v5470_v50  ;;  %v1933_v25 = vsel %vm281_vm3, %v1932_v34, %v1931_v30  ;;  %v3252_v26 = vadd.f32 %v3236_v54, %v5472_v16 }
 0xfbb   :  { %v3261_v61 = vrot.slane %v3246_v21, 7  ;;  %v3263_v29 = vrot.slane %v3247_v37, 6  ;;  %v3265_v58 = vrot.slane %v3248_v14, 5  ;;  %v3267_v57 = vrot.slane %v3249_v7, 4 }
 0xfbc   :  { %v3269_v49 = vrot.slane %v3250_v6, 3  ;;  %v1935_v12 = vsel %vm284_vm4, %v1934_v56, %v1933_v25  ;;  %v3271_v41 = vrot.slane %v3251_v43, 2  ;;  %v3273_v47 = vrot.slane %v3252_v26, 1 }
 0xfbd   :  { %v3262_v27 = vsel %vm272_vm0, %v3261_v61, %v3245_v24  ;;  %v1937_v59 = vsel %vm287_vm5, %v1936_v31, %v1935_v12 }
 0xfbe   :  { %v3264_v23 = vsel %vm275_vm1, %v3263_v29, %v3262_v27  ;;  %v1939_v46 = vsel %vm290_vm6, %v1938_v22, %v1937_v59 }
 0xfbf   :  { %v3266_v28 = vsel %vm278_vm2, %v3265_v58, %v3264_v23  ;;  %v1941_v52 = vsel %vm417_vm7, %v1939_v46, 0.0 }
 0xfc0   :  { %v3268_v40 = vsel %vm281_vm3, %v3267_v57, %v3266_v28 }
 0xfc1   :  { %v3270_v45 = vsel %vm284_vm4, %v3269_v49, %v3268_v40 }
 0xfc2   :  { %v3272_v62 = vsel %vm287_vm5, %v3271_v41, %v3270_v45 }
 0xfc3   :  { %v3274_v51 = vsel %vm290_vm6, %v3273_v47, %v3272_v62 }
 0xfc4   :  { %v3276_v38 = vsel %vm417_vm7, %v3274_v51, 0.0 }
 0xfc5   :  { %3277 = vadd.xlane.f32.xlu1 %v3276_v38 }
 0xfc9   :  { %1942 = vadd.xlane.f32.xlu1 %v1941_v52 }
0x1052   :  { %v3278_v33 = vpop.xlane.xlu1 %3277 }
0x1053   :  { %v3279_v15 = vmul.f32 0.03125, %v3278_v33 }
0x1055   :  { %v3281_v35 = vrot.slane %v3279_v15, 1  ;;  %v3282_v63 = vrot.slane %v3279_v15, 2  ;;  %v3283_v9 = vrot.slane %v3279_v15, 3  ;;  %v3284_v11 = vrot.slane %v3279_v15, 4 }
0x1056   :  { %v3285_v18 = vrot.slane %v3279_v15, 5  ;;  %v3286_v19 = vrot.slane %v3279_v15, 6  ;;  %v3287_v1 = vrot.slane %v3279_v15, 7  ;;  %v3296_v36 = vsub.f32 %v3245_v24, %v3279_v15 }
0x1057   :  { %v3297_v2 = vsub.f32 %v3246_v21, %v3281_v35  ;;  %v3298_v3 = vsub.f32 %v3247_v37, %v3282_v63  ;;  %v3299_v17 = vsub.f32 %v3248_v14, %v3283_v9  ;;  %v3300_v4 = vsub.f32 %v3249_v7, %v3284_v11  ;;  %v5474_v11 = vld [vmem:[#allocation34_spill] sm:$0xff] }
0x1058   :  { %v3301_v20 = vsub.f32 %v3250_v6, %v3285_v18  ;;  %v3302_v30 = vsub.f32 %v3251_v43, %v3286_v19  ;;  %v3303_v54 = vsub.f32 %v3252_v26, %v3287_v1  ;;  %v3304_v50 = vmul.f32 %v3296_v36, %v3296_v36 }
0x1059   :  { %v3305_v55 = vmul.f32 %v3297_v2, %v3297_v2  ;;  %v3306_v34 = vmul.f32 %v3298_v3, %v3298_v3  ;;  %v3307_v61 = vmul.f32 %v3299_v17, %v3299_v17  ;;  %v3308_v29 = vmul.f32 %v3300_v4, %v3300_v4 }
0x105a   :  { %v3309_v0 = vmul.f32 %v3301_v20, %v3301_v20  ;;  %v3310_v27 = vmul.f32 %v3302_v30, %v3302_v30  ;;  %v3311_v58 = vmul.f32 %v3303_v54, %v3303_v54 }
0x105b   :  { %v3320_v25 = vrot.slane %v3305_v55, 7  ;;  %v3322_v16 = vrot.slane %v3306_v34, 6  ;;  %v3324_v24 = vrot.slane %v3307_v61, 5  ;;  %v3326_v37 = vrot.slane %v3308_v29, 4 }
0x105c   :  { %v3328_v7 = vrot.slane %v3309_v0, 3  ;;  %v3330_v43 = vrot.slane %v3310_v27, 2  ;;  %v3332_v23 = vrot.slane %v3311_v58, 1 }
0x105d   :  { %v3321_v56 = vsel %vm272_vm0, %v3320_v25, %v3304_v50 }
0x105e   :  { %v3323_v21 = vsel %vm275_vm1, %v3322_v16, %v3321_v56 }
0x105f   :  { %v3325_v14 = vsel %vm278_vm2, %v3324_v24, %v3323_v21 }
0x1060   :  { %v3327_v6 = vsel %vm281_vm3, %v3326_v37, %v3325_v14 }
0x1061   :  { %v3329_v26 = vsel %vm284_vm4, %v3328_v7, %v3327_v6 }
0x1062   :  { %v3331_v57 = vsel %vm287_vm5, %v3330_v43, %v3329_v26 }
0x1063   :  { %v3333_v28 = vsel %vm290_vm6, %v3332_v23, %v3331_v57 }
0x1064   :  { %v3335_v49 = vsel %vm417_vm7, %v3333_v28, 0.0 }
0x1065   :  { %3336 = vadd.xlane.f32.xlu0 %v3335_v49 }
0x10f2   :  { %v3337_v8 = vpop.xlane.xlu0 %3336 }
0x10f3   :  { %v3338_v12 = vmul.f32 0.03125, %v3337_v8 }
0x10f5   :  { %v3339_v40 = vadd.f32 1e-05, %v3338_v12 }
0x10f7   :  { %4105 = vrsqrt.f32 %v3339_v40 }
0x1101   :  { %v4106_v41 = vpop.eup %4105 }
0x1102   :  { %v3342_v31 = vrot.slane %v4106_v41, 1  ;;  %v3343_v45 = vrot.slane %v4106_v41, 2  ;;  %v3344_v47 = vrot.slane %v4106_v41, 3  ;;  %v3345_v62 = vrot.slane %v4106_v41, 4 }
0x1103   :  { %v3346_v59 = vrot.slane %v4106_v41, 5  ;;  %v3347_v51 = vrot.slane %v4106_v41, 6  ;;  %v3348_v22 = vrot.slane %v4106_v41, 7  ;;  %v3357_v38 = vmul.f32 %v4106_v41, %v3296_v36 }
0x1104   :  { %v3358_v46 = vmul.f32 %v3342_v31, %v3297_v2  ;;  %v3359_v52 = vmul.f32 %v3343_v45, %v3298_v3  ;;  %v3360_v33 = vmul.f32 %v3344_v47, %v3299_v17  ;;  %v3361_v15 = vmul.f32 %v3345_v62, %v3300_v4  ;;  %v5475_v3 = vld [vmem:[#allocation35_spill] sm:$0xff] }
0x1105   :  { %v3362_v35 = vmul.f32 %v3346_v59, %v3301_v20  ;;  %v3363_v63 = vmul.f32 %v3347_v51, %v3302_v30  ;;  %v3364_v9 = vmul.f32 %v3348_v22, %v3303_v54  ;;  %v3365_v18 = vmul.f32 %v5474_v11, %v3357_v38 }
0x1106   :  { %v3366_v19 = vmul.f32 %v5474_v11, %v3358_v46  ;;  %v3367_v1 = vmul.f32 %v5474_v11, %v3359_v52  ;;  %v3368_v55 = vmul.f32 %v5474_v11, %v3360_v33  ;;  %v3369_v34 = vmul.f32 %v5474_v11, %v3361_v15 }
0x1107   :  { %v3370_v61 = vmul.f32 %v5474_v11, %v3362_v35  ;;  %v3371_v36 = vmul.f32 %v5474_v11, %v3363_v63  ;;  %v3372_v2 = vmul.f32 %v5474_v11, %v3364_v9  ;;  %v5202_v17 = vadd.f32 %v5475_v3, %v3365_v18 }
0x1108   :  { %v5205_v4 = vadd.f32 %v5475_v3, %v3366_v19  ;;  %v5208_v20 = vadd.f32 %v5475_v3, %v3367_v1  ;;  %v5211_v30 = vadd.f32 %v5475_v3, %v3368_v55  ;;  %v5214_v54 = vadd.f32 %v5475_v3, %v3369_v34  ;;  %v1943_v19 = vpop.xlane.xlu1 %1942 }
0x1109   :  { %v5217_v29 = vadd.f32 %v5475_v3, %v3370_v61  ;;  %v5220_v50 = vadd.f32 %v5475_v3, %v3371_v36  ;;  %v5223_v0 = vadd.f32 %v5475_v3, %v3372_v2  ;;  %v3381_v25 = vpack.c.bf16 %v5202_v17, %v5202_v17 }
0x110a   :  { %v3382_v16 = vpack.c.bf16 %v5205_v4, %v5205_v4  ;;  %v3383_v27 = vpack.c.bf16 %v5208_v20, %v5208_v20  ;;  %v3384_v58 = vpack.c.bf16 %v5211_v30, %v5211_v30  ;;  %v3385_v56 = vpack.c.bf16 %v5214_v54, %v5214_v54 }
0x110b   :  { %v3386_v24 = vpack.c.bf16 %v5217_v29, %v5217_v29  ;;  %v3387_v21 = vpack.c.bf16 %v5220_v50, %v5220_v50  ;;  %v3388_v37 = vpack.c.bf16 %v5223_v0, %v5223_v0  ;;  %v3397_v26 = vunpack.c.l.b16 %v3381_v25 }
0x110c   :  { %v3398_v14 = vunpack.c.l.b16 %v3382_v16  ;;  %v3399_v7 = vunpack.c.l.b16 %v3383_v27  ;;  %v3400_v6 = vunpack.c.l.b16 %v3384_v58  ;;  %v3401_v43 = vunpack.c.l.b16 %v3385_v56 }
0x110d   :  { %v3402_v23 = vunpack.c.l.b16 %v3386_v24  ;;  %v3403_v49 = vunpack.c.l.b16 %v3387_v21  ;;  %v3404_v8 = vunpack.c.l.b16 %v3388_v37  ;;  %v1944_v1 = vmul.f32 0.03125, %v1943_v19 }
0x110e   :  { %v3405_v57 = vrot.slane %v3398_v14, 7  ;;  %v3407_v28 = vrot.slane %v3399_v7, 6  ;;  %v3409_v40 = vrot.slane %v3400_v6, 5  ;;  %v3411_v31 = vrot.slane %v3401_v43, 4 }
0x110f   :  { %v3413_v47 = vrot.slane %v3402_v23, 3  ;;  %v3415_v59 = vrot.slane %v3403_v49, 2  ;;  %v3417_v22 = vrot.slane %v3404_v8, 1  ;;  %v1946_v55 = vrot.slane %v1944_v1, 1 }
0x1110   :  { %v3406_v12 = vsel %vm272_vm0, %v3405_v57, %v3397_v26  ;;  %v1947_v34 = vrot.slane %v1944_v1, 2  ;;  %v1948_v2 = vrot.slane %v1944_v1, 3  ;;  %v5260_v3 = vsub.f32 %v5136_v5, %v1944_v1 }
0x1111   :  { %v3408_v41 = vsel %vm275_vm1, %v3407_v28, %v3406_v12  ;;  %v5252_v61 = vsub.f32 %v5129_v10, %v1946_v55  ;;  %v1949_v16 = vrot.slane %v1944_v1, 4  ;;  %v1950_v10 = vrot.slane %v1944_v1, 5 }
0x1112   :  { %v3410_v45 = vsel %vm278_vm2, %v3409_v40, %v3408_v41  ;;  %v5255_v36 = vsub.f32 %v5132_v48, %v1947_v34  ;;  %v5265_v27 = vsub.f32 %v5140_v60, %v1948_v2  ;;  %v1969_v48 = vmul.f32 %v5260_v3, %v5260_v3 }
0x1113   :  { %v3412_v62 = vsel %vm281_vm3, %v3411_v31, %v3410_v45  ;;  %v1951_v24 = vrot.slane %v1944_v1, 6  ;;  %v5270_v21 = vsub.f32 %v5147_v32, %v1949_v16  ;;  %v5276_v7 = vsub.f32 %v5151_v53, %v1950_v10 }
0x1114   :  { %v3414_v51 = vsel %vm284_vm4, %v3413_v47, %v3412_v62  ;;  %v1971_v25 = vmul.f32 %v5255_v36, %v5255_v36  ;;  %v1972_v5 = vmul.f32 %v5265_v27, %v5265_v27  ;;  %v1952_v23 = vrot.slane %v1944_v1, 7 }
0x1115   :  { %v3416_v38 = vsel %vm287_vm5, %v3415_v59, %v3414_v51  ;;  %v5281_v57 = vsub.f32 %v5163_v44, %v1951_v24  ;;  %v1973_v32 = vmul.f32 %v5270_v21, %v5270_v21 }
0x1116   :  { %v3418_v46 = vsel %vm290_vm6, %v3417_v22, %v3416_v38  ;;  %v1987_v56 = vrot.slane %v1971_v25, 6  ;;  %v1989_v28 = vrot.slane %v1972_v5, 5  ;;  %v5293_v22 = vsub.f32 %v5172_v13, %v1952_v23 }
0x1117   :  { %v3419_v52 = vpack.c.b16 %v3418_v46, %v3418_v46  ;;  %v1991_v38 = vrot.slane %v1973_v32, 4 }
0x1119   :  { %3985 = vmatmul.mubr.msk.bf16.vlgmr.msra.gmra.mrb[52].mxu1 %vm417_vm7, %v3419_v52 }
0x11ec   :  { %v3457_v33 = vpop.f32.mrb[52].mxu1 }
0x11ed   :  { %v3458_v15 = vadd.f32 %v5027_v39, %v3457_v33  ;;  %v3986_v35 = vpop.f32.mrb[53].mxu1  ;;  %v1970_v39 = vmul.f32 %v5252_v61, %v5252_v61 }
0x11ee   :  { %v3460_v63 = vpop.f32.mrb[54].mxu1 }
0x11ef   :  { %v3463_v9 = vmax.f32 %v3458_v15, 0.0  ;;  %v3987_v11 = vpop.f32.mrb[55].mxu1  ;;  %v1985_v58 = vrot.slane %v1970_v39, 7 }
0x11f1   :  { %v3464_v18 = vpack.c.bf16 %v3463_v9, %v3463_v9  ;;  %v1986_v37 = vsel %vm272_vm0, %v1985_v58, %v1969_v48 }
0x11f2   :  { %v1988_v43 = vsel %vm275_vm1, %v1987_v56, %v1986_v37 }
0x11f3   :  { %3997 = vmatmul.mubr.msk.bf16.vlgmr.msra.gmra.mrb[52].mxu0 %vm1850_vm11, %v3464_v18  ;;  %v1990_v45 = vsel %vm278_vm2, %v1989_v28, %v1988_v43 }
0x12c6   :  { %v3502_v14 = vpop.f32.mrb[52].mxu0 }
0x12c7   :  { %v3503_v60 = vadd.f32 %v5124_v42, %v3502_v14  ;;  %v3998_v6 = vpop.f32.mrb[53].mxu0  ;;  %v1974_v42 = vmul.f32 %v5276_v7, %v5276_v7 }
0x12c8   :  { %v3505_v26 = vpop.f32.mrb[54].mxu0 }
0x12c9   :  { %v3999_v49 = vpop.f32.mrb[55].mxu0  ;;  %v3509_v8 = vrot.slane %v3503_v60, 1  ;;  %v3510_v12 = vrot.slane %v3503_v60, 2  ;;  %v3511_v40 = vrot.slane %v3503_v60, 3  ;;  %v3512_v53 = vrot.slane %v3503_v60, 4 }
0x12ca   :  { %v3513_v41 = vrot.slane %v3503_v60, 5  ;;  %v3514_v31 = vrot.slane %v3503_v60, 6  ;;  %v3515_v47 = vrot.slane %v3503_v60, 7  ;;  %v3524_v46 = vadd.f32 %v3503_v60, %v5202_v17 }
0x12cb   :  { %v3525_v44 = vadd.f32 %v3509_v8, %v5205_v4  ;;  %v3526_v62 = vadd.f32 %v3510_v12, %v5208_v20  ;;  %v3527_v59 = vadd.f32 %v3511_v40, %v5211_v30  ;;  %v3528_v51 = vadd.f32 %v3512_v53, %v5214_v54 }
0x12cc   :  { %v3529_v52 = vadd.f32 %v3513_v41, %v5217_v29  ;;  %v3530_v35 = vadd.f32 %v3514_v31, %v5220_v50  ;;  %v1975_v4 = vmul.f32 %v5281_v57, %v5281_v57  ;;  %v1992_v20 = vsel %vm281_vm3, %v1991_v38, %v1990_v45 }
0x12cd   :  { %v3540_v33 = vrot.slane %v3525_v44, 7  ;;  %v3542_v15 = vrot.slane %v3526_v62, 6  ;;  %v3531_v30 = vadd.f32 %v3515_v47, %v5223_v0  ;;  %v3544_v13 = vrot.slane %v3527_v59, 5 }
0x12ce   :  { %v1993_v63 = vrot.slane %v1974_v42, 3  ;;  %v3546_v17 = vrot.slane %v3528_v51, 4  ;;  %v3548_v11 = vrot.slane %v3529_v52, 3  ;;  %v1976_v50 = vmul.f32 %v5293_v22, %v5293_v22 }
0x12cf   :  { %v3541_v54 = vsel %vm272_vm0, %v3540_v33, %v3524_v46  ;;  %v3550_v1 = vrot.slane %v3530_v35, 2  ;;  %v1995_v55 = vrot.slane %v1975_v4, 2  ;;  %v3552_v34 = vrot.slane %v3531_v30, 1 }
0x12d0   :  { %v3543_v9 = vsel %vm275_vm1, %v3542_v15, %v3541_v54  ;;  %v1994_v18 = vsel %vm284_vm4, %v1993_v63, %v1992_v20  ;;  %v1997_v16 = vrot.slane %v1976_v50, 1 }
0x12d1   :  { %v3545_v29 = vsel %vm278_vm2, %v3544_v13, %v3543_v9  ;;  %v1996_v39 = vsel %vm287_vm5, %v1995_v55, %v1994_v18 }
0x12d2   :  { %v3547_v19 = vsel %vm281_vm3, %v3546_v17, %v3545_v29  ;;  %v1998_v10 = vsel %vm290_vm6, %v1997_v16, %v1996_v39 }
0x12d3   :  { %v3549_v0 = vsel %vm284_vm4, %v3548_v11, %v3547_v19  ;;  %v2000_v48 = vsel %vm417_vm7, %v1998_v10, 0.0  ;;  %v5356_v19 = vld [vmem:[#allocation20] ss:$0 sm:$0xff] }
0x12d4   :  { %v3551_v2 = vsel %vm287_vm5, %v3550_v1, %v3549_v0 }
0x12d5   :  { %v3553_v25 = vsel %vm290_vm6, %v3552_v34, %v3551_v2 }
0x12d6   :  { %v3555_v58 = vsel %vm417_vm7, %v3553_v25, 0.0 }
0x12d7   :  { %3556 = vadd.xlane.f32.xlu1 %v3555_v58  ;;  %v5359_v58 = vld [vmem:[#allocation22] ss:$0 sm:$0xff] }
0x12db   :  { %2001 = vadd.xlane.f32.xlu1 %v2000_v48 }
0x1364   :  { %v3557_v56 = vpop.xlane.xlu1 %3556 }
0x1365   :  { %v3558_v24 = vmul.f32 0.03125, %v3557_v56 }
0x1367   :  { %v3560_v5 = vrot.slane %v3558_v24, 1  ;;  %v3561_v37 = vrot.slane %v3558_v24, 2  ;;  %v3562_v14 = vrot.slane %v3558_v24, 3  ;;  %v3563_v60 = vrot.slane %v3558_v24, 4 }
0x1368   :  { %v2002_v6 = vpop.xlane.xlu1 %2001  ;;  %v3564_v43 = vrot.slane %v3558_v24, 5  ;;  %v3565_v26 = vrot.slane %v3558_v24, 6  ;;  %v3566_v23 = vrot.slane %v3558_v24, 7  ;;  %v5316_v32 = vsub.f32 %v3524_v46, %v3558_v24 }
0x1369   :  { %v2003_v28 = vmul.f32 0.03125, %v2002_v6  ;;  %v5318_v49 = vsub.f32 %v3525_v44, %v3560_v5  ;;  %v5320_v8 = vsub.f32 %v3526_v62, %v3561_v37  ;;  %v5322_v12 = vsub.f32 %v3527_v59, %v3562_v14 }
0x136a   :  { %v5324_v40 = vsub.f32 %v3528_v51, %v3563_v60  ;;  %v5326_v53 = vsub.f32 %v3529_v52, %v3564_v43  ;;  %v5328_v41 = vsub.f32 %v3530_v35, %v3565_v26  ;;  %v5330_v42 = vsub.f32 %v3531_v30, %v3566_v23 }
0x136b   :  { %v2004_v31 = vadd.f32 1e-05, %v2003_v28  ;;  %v3584_v45 = vmul.f32 %v5318_v49, %v5318_v49  ;;  %v3585_v47 = vmul.f32 %v5320_v8, %v5320_v8  ;;  %v3583_v44 = vmul.f32 %v5316_v32, %v5316_v32 }
0x136c   :  { %v3586_v62 = vmul.f32 %v5322_v12, %v5322_v12  ;;  %v3587_v59 = vmul.f32 %v5324_v40, %v5324_v40  ;;  %v3588_v51 = vmul.f32 %v5326_v53, %v5326_v53  ;;  %v3589_v52 = vmul.f32 %v5328_v41, %v5328_v41 }
0x136d   :  { %4107 = vrsqrt.f32 %v2004_v31  ;;  %v3599_v38 = vrot.slane %v3584_v45, 7  ;;  %v3601_v46 = vrot.slane %v3585_v47, 6  ;;  %v3590_v33 = vmul.f32 %v5330_v42, %v5330_v42 }
0x136e   :  { %v3603_v35 = vrot.slane %v3586_v62, 5  ;;  %v3605_v20 = vrot.slane %v3587_v59, 4  ;;  %v3607_v54 = vrot.slane %v3588_v51, 3  ;;  %v3609_v63 = vrot.slane %v3589_v52, 2 }
0x136f   :  { %v3600_v15 = vsel %vm272_vm0, %v3599_v38, %v3583_v44  ;;  %v3611_v17 = vrot.slane %v3590_v33, 1 }
0x1370   :  { %v3602_v4 = vsel %vm275_vm1, %v3601_v46, %v3600_v15 }
0x1371   :  { %v3604_v30 = vsel %vm278_vm2, %v3603_v35, %v3602_v4 }
0x1372   :  { %v3606_v13 = vsel %vm281_vm3, %v3605_v20, %v3604_v30 }
0x1373   :  { %v3608_v9 = vsel %vm284_vm4, %v3607_v54, %v3606_v13 }
0x1374   :  { %v3610_v29 = vsel %vm287_vm5, %v3609_v63, %v3608_v9 }
0x1375   :  { %v3612_v11 = vsel %vm290_vm6, %v3611_v17, %v3610_v29 }
0x1376   :  { %v3614_v50 = vsel %vm417_vm7, %v3612_v11, 0.0 }
0x1377   :  { %v4108_v18 = vpop.eup %4107  ;;  %3615 = vadd.xlane.f32.xlu1 %v3614_v50 }
0x1378   :  { %v2007_v1 = vrot.slane %v4108_v18, 1  ;;  %v2008_v55 = vrot.slane %v4108_v18, 2  ;;  %v2009_v0 = vrot.slane %v4108_v18, 3  ;;  %v2010_v34 = vrot.slane %v4108_v18, 4 }
0x1379   :  { %v2011_v2 = vrot.slane %v4108_v18, 5  ;;  %v2012_v39 = vrot.slane %v4108_v18, 6  ;;  %v2013_v25 = vrot.slane %v4108_v18, 7  ;;  %v2022_v16 = vmul.f32 %v4108_v18, %v5260_v3 }
0x137a   :  { %v2023_v10 = vmul.f32 %v2007_v1, %v5252_v61  ;;  %v2024_v48 = vmul.f32 %v2008_v55, %v5255_v36  ;;  %v2025_v56 = vmul.f32 %v2009_v0, %v5265_v27  ;;  %v2026_v24 = vmul.f32 %v2010_v34, %v5270_v21 }
0x137b   :  { %v2027_v5 = vmul.f32 %v2011_v2, %v5276_v7  ;;  %v2028_v37 = vmul.f32 %v2012_v39, %v5281_v57  ;;  %v2029_v14 = vmul.f32 %v2013_v25, %v5293_v22  ;;  %v2036_v60 = vmul.f32 %v5356_v19, %v2022_v16 }
0x137c   :  { %v2037_v3 = vmul.f32 %v5356_v19, %v2023_v10  ;;  %v2038_v6 = vmul.f32 %v5356_v19, %v2024_v48  ;;  %v2039_v61 = vmul.f32 %v5356_v19, %v2025_v56  ;;  %v2040_v36 = vmul.f32 %v5356_v19, %v2026_v24 }
0x137d   :  { %v2041_v27 = vmul.f32 %v5356_v19, %v2027_v5  ;;  %v2042_v21 = vmul.f32 %v5356_v19, %v2028_v37  ;;  %v2043_v7 = vmul.f32 %v5356_v19, %v2029_v14  ;;  %v2050_v57 = vadd.f32 %v5359_v58, %v2036_v60 }
0x137e   :  { %v2051_v22 = vadd.f32 %v5359_v58, %v2037_v3  ;;  %v2052_v43 = vadd.f32 %v5359_v58, %v2038_v6  ;;  %v2053_v26 = vadd.f32 %v5359_v58, %v2039_v61  ;;  %v2054_v23 = vadd.f32 %v5359_v58, %v2040_v36 }
0x137f   :  { %v2055_v28 = vadd.f32 %v5359_v58, %v2041_v27  ;;  %v2056_v31 = vadd.f32 %v5359_v58, %v2042_v21  ;;  %v2057_v45 = vadd.f32 %v5359_v58, %v2043_v7  ;;  %2059 = vst.msk [vmem:[#allocation23] sm:$0x1] %vm2058_vm12, %v2050_v57 }
0x1380   :  { %2060 = vst.msk [vmem:[#allocation23 + $0x2] sm:$0x1] %vm2058_vm12, %v2051_v22  ;;  %2061 = vst.msk [vmem:[#allocation23 + $0x4] sm:$0x1] %vm2058_vm12, %v2052_v43 }
0x1381   :  { %2062 = vst.msk [vmem:[#allocation23 + $0x6] sm:$0x1] %vm2058_vm12, %v2053_v26  ;;  %2063 = vst.msk [vmem:[#allocation23 + $0x8] sm:$0x1] %vm2058_vm12, %v2054_v23 }
0x1382   :  { %2064 = vst.msk [vmem:[#allocation23 + $0xa] sm:$0x1] %vm2058_vm12, %v2055_v28  ;;  %2065 = vst.msk [vmem:[#allocation23 + $0xc] sm:$0x1] %vm2058_vm12, %v2056_v31 }
0x1383   :  { %2066 = vst.msk [vmem:[#allocation23 + $0xe] sm:$0x1] %vm2058_vm12, %v2057_v45 }
0x1404   :  { %v3616_v47 = vpop.xlane.xlu1 %3615 }
0x1405   :  { %v3617_v44 = vmul.f32 0.03125, %v3616_v47 }
0x1407   :  { %v3618_v62 = vadd.f32 1e-05, %v3617_v44 }
0x1409   :  { %4109 = vrsqrt.f32 %v3618_v62 }
0x1413   :  { %v4110_v59 = vpop.eup %4109 }
0x1414   :  { %v3621_v51 = vrot.slane %v4110_v59, 1  ;;  %v3622_v38 = vrot.slane %v4110_v59, 2  ;;  %v3623_v46 = vrot.slane %v4110_v59, 3  ;;  %v3624_v52 = vrot.slane %v4110_v59, 4 }
0x1415   :  { %v3625_v33 = vrot.slane %v4110_v59, 5  ;;  %v3626_v15 = vrot.slane %v4110_v59, 6  ;;  %v3627_v35 = vrot.slane %v4110_v59, 7  ;;  %v3636_v4 = vmul.f32 %v4110_v59, %v5316_v32 }
0x1416   :  { %v3637_v20 = vmul.f32 %v3621_v51, %v5318_v49  ;;  %v3638_v30 = vmul.f32 %v3622_v38, %v5320_v8  ;;  %v3639_v54 = vmul.f32 %v3623_v46, %v5322_v12  ;;  %v3640_v13 = vmul.f32 %v3624_v52, %v5324_v40 }
0x1417   :  { %v3641_v63 = vmul.f32 %v3625_v33, %v5326_v53  ;;  %v3642_v9 = vmul.f32 %v3626_v15, %v5328_v41  ;;  %v3643_v17 = vmul.f32 %v3627_v35, %v5330_v42  ;;  %v3644_v29 = vmul.f32 %v5356_v19, %v3636_v4 }
0x1418   :  { %v3645_v11 = vmul.f32 %v5356_v19, %v3637_v20  ;;  %v3646_v32 = vmul.f32 %v5356_v19, %v3638_v30  ;;  %v3647_v49 = vmul.f32 %v5356_v19, %v3639_v54  ;;  %v3648_v8 = vmul.f32 %v5356_v19, %v3640_v13 }
0x1419   :  { %v3649_v12 = vmul.f32 %v5356_v19, %v3641_v63  ;;  %v3650_v40 = vmul.f32 %v5356_v19, %v3642_v9  ;;  %v3651_v53 = vmul.f32 %v5356_v19, %v3643_v17  ;;  %v3652_v41 = vadd.f32 %v5359_v58, %v3644_v29 }
0x141a   :  { %v3653_v42 = vadd.f32 %v5359_v58, %v3645_v11  ;;  %v3654_v50 = vadd.f32 %v5359_v58, %v3646_v32  ;;  %v3655_v18 = vadd.f32 %v5359_v58, %v3647_v49  ;;  %v3656_v1 = vadd.f32 %v5359_v58, %v3648_v8 }
0x141b   :  { %v3657_v55 = vadd.f32 %v5359_v58, %v3649_v12  ;;  %v3658_v0 = vadd.f32 %v5359_v58, %v3650_v40  ;;  %v3659_v34 = vadd.f32 %v5359_v58, %v3651_v53  ;;  %3660 = vst.msk [vmem:[#allocation23 + $0x1] sm:$0x1] %vm2058_vm12, %v3652_v41 }
0x141c   :  { %3661 = vst.msk [vmem:[#allocation23 + $0x3] sm:$0x1] %vm2058_vm12, %v3653_v42  ;;  %3662 = vst.msk [vmem:[#allocation23 + $0x5] sm:$0x1] %vm2058_vm12, %v3654_v50 }
0x141d   :  { %3663 = vst.msk [vmem:[#allocation23 + $0x7] sm:$0x1] %vm2058_vm12, %v3655_v18  ;;  %3664 = vst.msk [vmem:[#allocation23 + $0x9] sm:$0x1] %vm2058_vm12, %v3656_v1 }
0x141e   :  { %3665 = vst.msk [vmem:[#allocation23 + $0xb] sm:$0x1] %vm2058_vm12, %v3657_v55  ;;  %3666 = vst.msk [vmem:[#allocation23 + $0xd] sm:$0x1] %vm2058_vm12, %v3658_v0 }
0x141f   :  { %3667 = vst.msk [vmem:[#allocation23 + $0xf] sm:$0x1] %vm2058_vm12, %v3659_v34 }
0x1420   :  { %4408 = shalt.err (!%p4405_p10)
}
0x1421   :  { %s4409_s3 = scalar_lea.hbm %s5452_s13, 256 }
0x1422   :  { %p4410_p11 = scmp.ne.s32.totalorder %s5452_s13, %s4409_s3  ;;  %p4413_p12 = scmp.lt.u32.totalorder %s4409_s3, %s5452_s13 }
0x1424   :  { %p4415_p13 = pnand %p4413_p12, %p4410_p11 }
0x1426   :  { %4418 = shalt.err (!%p4415_p13)
}
0x1427   :  { %3679 = dma.vmem_to_hbm [thread:$0]  %s3674_s7, 256, %s5452_s13, [#allocation4], %s4444_s11, %s4444_s11, %s4445_s15  }
0x1428   :  { %4433 = dma.done.wait [#allocation4], 256  }
0x1429   :  { %4434 = vsyncadd [#allocation4], 4294967040 }
0x142a   :  { %3683 = vsyncpa [#allocation3], 1 }
0x142b   :  { %3684 = vsyncpa [#allocation6], 1 }
0x142c   :  { %3685 = vsyncpa [#allocation9], 1 }
0x142d   :  { %3686 = vsyncpa [#allocation12], 1 }
0x142e   :  { %3687 = vsyncpa [#allocation15], 1 }
0x142f   :  { %3688 = vsyncpa [#allocation18], 1 }
0x1430   :  { %3689 = vsyncpa [#allocation21], 1 }
0x1431   :  { %3690 = vsyncpa [#allocation4], 1 }

</bundles_post_ra>
